<compile_context>
chip_gen: v5e
topology: v5e:2x2
jax: 0.10.0
libtpu: 0.0.40
codegen_flags: <defaults>
</compile_context>

<pallas_src>
import functools

import numpy as np
import jax
import jax.numpy as jnp
from jax.experimental import pallas as pl
from jax.experimental.pallas import tpu as pltpu

# ----------------------------- model dimensions -----------------------------
Z_DIM = 32        # latent z
C_DIM = 16        # conditioning c (camera params in EG3D)
W_DIM = 32        # intermediate latent w
NUM_WS = 8        # nominal ws count (only indices 0 and 1 are consumed here)
C0 = 16           # backbone const-input channels
C1 = 32           # backbone conv0 output channels
IMG_CH = 3        # toRGB output channels
H = W = 16        # spatial resolution of the synthetic backbone
HW = H * W
SQRT2 = float(np.sqrt(2.0))

# rendering_kwargs analogue
C_GEN_CONDITIONING_ZERO = False
C_SCALE = 1.0

# --------------------- parameter slab layout (static offsets) ----------------
SLAB_COLS = C0 + C1                     # 48: widest row (fused affine [aff0|aff1])
_R_MAP0 = 0                             # map_w0      (Z+C, W_DIM)
_R_MAP1 = _R_MAP0 + (Z_DIM + C_DIM)     # 48: map_w1  (W_DIM, W_DIM)
_R_AFF = _R_MAP1 + W_DIM                # 80: aff_w   (W_DIM, C0+C1)
_R_CONV = _R_AFF + W_DIM                # 112: conv0_w (C1, C0)
_R_RGB = _R_CONV + C1                   # 144: rgb_w  (IMG_CH, C1)
SLAB_ROWS = _R_RGB + IMG_CH             # 147 (all offsets are multiples of 8)


# ----------------------------- shared forward math ---------------------------
def _lrelu(v):
    return jnp.where(v >= 0, v, 0.2 * v) * SQRT2


def _forward_math(z, c, w_slab, b_slab, const,
                  *, batch, truncation_psi, truncation_cutoff):
    """Full EG3DWrapper.forward math on plain arrays.  Shared by the Pallas
    kernel body and the pure-JAX reference.  Returns an (IMG_CH, B*HW) f32
    image slab (columns grouped by batch)."""
    f32 = jnp.float32

    # ---- unpack slabs (static, sublane-aligned value slices) ----
    w_all = w_slab.astype(f32)                      # single bf16 -> f32 upcast
    map_w0 = w_all[_R_MAP0:_R_MAP1, :W_DIM]         # (Z+C, W_DIM)
    map_w1 = w_all[_R_MAP1:_R_AFF, :W_DIM]          # (W_DIM, W_DIM)
    aff_w = w_all[_R_AFF:_R_CONV, :C0 + C1]         # (W_DIM, C0+C1)
    conv0_w = w_all[_R_CONV:_R_RGB, :C0]            # (C1, C0)
    rgb_w = w_all[_R_RGB:SLAB_ROWS, :C1]            # (IMG_CH, C1)

    b_all = b_slab.astype(f32)
    map_b0 = b_all[0:1, :W_DIM]
    map_b1 = b_all[1:2, :W_DIM]
    w_avg = b_all[2:3, :W_DIM]
    aff_b = b_all[3:4, :C0 + C1]

    const = const.astype(f32)                       # (C0, HW)

    # ---- mapping network (EG3DWrapper.mapping / backbone.mapping) ----
    z = z.astype(f32)
    c = c.astype(f32)
    if C_GEN_CONDITIONING_ZERO:
        c = jnp.zeros_like(c)
    c = c * C_SCALE
    zn = z * jax.lax.rsqrt(jnp.mean(z * z, axis=1, keepdims=True) + 1e-8)
    cn = c * jax.lax.rsqrt(jnp.mean(c * c, axis=1, keepdims=True) + 1e-8)

    # split first matmul (zn|cn concat avoided -> no in-kernel lane shuffle)
    h = _lrelu(jnp.dot(zn, map_w0[:Z_DIM], preferred_element_type=f32)
               + jnp.dot(cn, map_w0[Z_DIM:], preferred_element_type=f32)
               + map_b0)                                           # (B, W_DIM)
    w_lat = _lrelu(jnp.dot(h, map_w1, preferred_element_type=f32)
                   + map_b1)                                       # (B, W_DIM)

    # truncation (lerp toward w_avg); identity for the default psi=1 call
    if truncation_psi != 1.0:
        w_trunc = w_avg + truncation_psi * (w_lat - w_avg)
    else:
        w_trunc = w_lat
    cutoff = NUM_WS if truncation_cutoff is None else truncation_cutoff
    w_style0 = w_trunc if 0 < cutoff else w_lat     # style for conv0
    w_style1 = w_trunc if 1 < cutoff else w_lat     # style for toRGB

    # ---- style affines; fused into one matmul when both styles coincide ----
    if w_style0 is w_style1:
        s01 = jnp.dot(w_style0, aff_w, preferred_element_type=f32) + aff_b
        s0 = s01[:, :C0]                            # (B, C0)
        s1 = s01[:, C0:]                            # (B, C1)
    else:
        s0 = (jnp.dot(w_style0, aff_w[:, :C0], preferred_element_type=f32)
              + aff_b[:, :C0])
        s1 = (jnp.dot(w_style1, aff_w[:, C0:], preferred_element_type=f32)
              + aff_b[:, C0:])

    # ---- conv0: modulated 1x1 conv with demodulation + lrelu (vectorized) ----
    # activation-side modulation: one lane-dense (C1,C0)@(C0,B*HW) matmul.
    s0t = s0.T                                                      # (C0, B)
    x0 = (s0t[:, :, None] * const[:, None, :]).reshape(C0, batch * HW)
    y0 = jnp.dot(conv0_w, x0, preferred_element_type=f32)           # (C1, B*HW)

    # demodulation as ONE matmul:  D = rsqrt((W*W) @ (s0*s0)^T + eps)  (C1, B)
    d = jax.lax.rsqrt(jnp.dot(conv0_w * conv0_w, (s0 * s0).T,
                              preferred_element_type=f32) + 1e-8)

    # ---- toRGB: modulated 1x1 conv, no demodulation, linear ----
    # d > 0  =>  lrelu(y0*d)*s1 == lrelu(y0) * (d*s1); fuse the two per-(C1,B)
    # scales and apply once to the big tensor.  (Not valid for s1 alone.)
    scale = d * s1.T                                                # (C1, B)
    x1 = (_lrelu(y0).reshape(C1, batch, HW)
          * scale[:, :, None]).reshape(C1, batch * HW)              # (C1, B*HW)
    img = jnp.dot(rgb_w, x1, preferred_element_type=f32)            # (IMG_CH, B*HW)
    return img


# --------------------------------- fused kernel ------------------------------
def _eg3d_fused_kernel(z_ref, c_ref, wslab_ref, bslab_ref, const_ref, o_ref,
                       *, batch, truncation_psi, truncation_cutoff):
    img = _forward_math(
        z_ref[...], c_ref[...], wslab_ref[...], bslab_ref[...], const_ref[...],
        batch=batch, truncation_psi=truncation_psi,
        truncation_cutoff=truncation_cutoff)
    o_ref[...] = img.astype(o_ref.dtype)            # single lane-dense store


# ------------------------------ parameter init -------------------------------
def make_params(key):
    ks = jax.random.split(key, 8)
    f32, bf16 = jnp.float32, jnp.bfloat16

    map_w0 = jax.random.normal(ks[0], (Z_DIM + C_DIM, W_DIM), f32) / np.sqrt(Z_DIM + C_DIM)
    map_w1 = jax.random.normal(ks[1], (W_DIM, W_DIM), f32) / np.sqrt(W_DIM)
    aff0_w = jax.random.normal(ks[3], (W_DIM, C0), f32) / np.sqrt(W_DIM)
    aff1_w = jax.random.normal(ks[5], (W_DIM, C1), f32) / np.sqrt(W_DIM)
    conv0_w = jax.random.normal(ks[4], (C1, C0), f32) / np.sqrt(C0)
    rgb_w = jax.random.normal(ks[6], (IMG_CH, C1), f32) / np.sqrt(C1)
    const = jax.random.normal(ks[2], (C0, HW), f32)

    def pad_cols(w):
        return jnp.pad(w, ((0, 0), (0, SLAB_COLS - w.shape[1])))

    # bf16 weight slab (one HBM->VMEM DMA for all matmul weights)
    w_slab = jnp.concatenate([
        pad_cols(map_w0),                                 # rows [0, 48)
        pad_cols(map_w1),                                 # rows [48, 80)
        jnp.concatenate([aff0_w, aff1_w], axis=1),        # rows [80, 112): fused affine
        pad_cols(conv0_w),                                # rows [112, 144)
        pad_cols(rgb_w),                                  # rows [144, 147)
    ], axis=0).astype(bf16)
    assert w_slab.shape == (SLAB_ROWS, SLAB_COLS)

    # f32 bias slab: map_b0, map_b1, w_avg (all zeros) + [aff0_b|aff1_b] (ones,
    # StyleGAN affine bias = 1)
    b_slab = jnp.concatenate([jnp.zeros((3, SLAB_COLS), f32),
                              jnp.ones((1, SLAB_COLS), f32)], axis=0)

    return {"w_slab": w_slab, "b_slab": b_slab, "const": const}


# --------------------------------- forward -----------------------------------
def eg3d_wrapper_forward(params, z, c, truncation_psi=1.0, truncation_cutoff=None):
    B = z.shape[0]
    kernel = functools.partial(
        _eg3d_fused_kernel, batch=B,
        truncation_psi=float(truncation_psi),
        truncation_cutoff=truncation_cutoff)

    vmem = pl.BlockSpec(memory_space=pltpu.MemorySpace.VMEM)
    img = pl.pallas_call(
        kernel,
        out_shape=jax.ShapeDtypeStruct((IMG_CH, B * HW), jnp.float32),
        in_specs=[vmem] * 5,
        out_specs=vmem,
    )(z, c, params["w_slab"], params["b_slab"], params["const"])

    # layout plumbing in the wrapper (free at this size): (3, B*HW) -> NCHW
    return jnp.transpose(img.reshape(IMG_CH, B, HW), (1, 0, 2)).reshape(B, IMG_CH, H, W)


def eg3d_reference(params, z, c, truncation_psi=1.0, truncation_cutoff=None):
    """Pure-JAX mirror of the fused kernel math (for a tolerance check)."""
    B = z.shape[0]
    img = _forward_math(
        z, c, params["w_slab"], params["b_slab"], params["const"],
        batch=B, truncation_psi=float(truncation_psi),
        truncation_cutoff=truncation_cutoff)
    return jnp.transpose(img.reshape(IMG_CH, B, HW), (1, 0, 2)).reshape(B, IMG_CH, H, W)


# ----------------------------------- main ------------------------------------
if __name__ == "__main__":
    key = jax.random.PRNGKey(0)
    kp, kz, kc = jax.random.split(key, 3)
    params = make_params(kp)

    B = 2
    z = jax.random.normal(kz, (B, Z_DIM), jnp.float32)
    c = jax.random.normal(kc, (B, C_DIM), jnp.float32)

    fwd = jax.jit(lambda z_, c_: eg3d_wrapper_forward(params, z_, c_))
    img = jax.block_until_ready(fwd(z, c))

    assert img.shape == (B, IMG_CH, H, W), img.shape
    assert img.dtype == jnp.float32
    assert bool(jnp.all(jnp.isfinite(img)))

    # sanity check against a pure-JAX mirror of the same math (same bf16-stored
    # weights); loose tolerance for accumulation-order / lowering differences.
    # NOTE: this validates the Pallas lowering, not fidelity to the original
    # PyTorch EG3D numerics (activation-side vs weight-side modulation order).
    ref = jax.block_until_ready(eg3d_reference(params, z, c))
    assert bool(jnp.allclose(img, ref, rtol=2e-2, atol=2e-2)), float(
        jnp.max(jnp.abs(img - ref)))

    print("KERNEL_OK")
</pallas_src>

<mosaic_0001>
module attributes {stable_mosaic.version = 11 : i64} {
  func.func @_eg3d_fused_kernel(%arg0: memref<2x32xf32, #tpu.memory_space<vmem>>, %arg1: memref<2x16xf32, #tpu.memory_space<vmem>>, %arg2: memref<147x48xbf16, #tpu.memory_space<vmem>>, %arg3: memref<4x48xf32, #tpu.memory_space<vmem>>, %arg4: memref<16x256xf32, #tpu.memory_space<vmem>>, %arg5: memref<3x512xf32, #tpu.memory_space<vmem>>) attributes {dimension_semantics = [], scalar_prefetch = 0 : i64, scratch_operands = 0 : i64, tpu.core_type = #tpu.core_type<tc>} {
    %c0 = arith.constant 0 : index
    %c0_0 = arith.constant 0 : index
    %0 = vector.load %arg0[%c0, %c0_0] : memref<2x32xf32, #tpu.memory_space<vmem>>, vector<2x32xf32>
    %c0_1 = arith.constant 0 : index
    %c0_2 = arith.constant 0 : index
    %1 = vector.load %arg1[%c0_1, %c0_2] : memref<2x16xf32, #tpu.memory_space<vmem>>, vector<2x16xf32>
    %c0_3 = arith.constant 0 : index
    %c0_4 = arith.constant 0 : index
    %2 = vector.load %arg2[%c0_3, %c0_4] : memref<147x48xbf16, #tpu.memory_space<vmem>>, vector<147x48xbf16>
    %c0_5 = arith.constant 0 : index
    %c0_6 = arith.constant 0 : index
    %3 = vector.load %arg3[%c0_5, %c0_6] : memref<4x48xf32, #tpu.memory_space<vmem>>, vector<4x48xf32>
    %c0_7 = arith.constant 0 : index
    %c0_8 = arith.constant 0 : index
    %4 = vector.load %arg4[%c0_7, %c0_8] : memref<16x256xf32, #tpu.memory_space<vmem>>, vector<16x256xf32>
    %5 = arith.extf %2 : vector<147x48xbf16> to vector<147x48xf32>
    %6 = vector.extract_strided_slice %5 {offsets = [0, 0], sizes = [48, 32], strides = [1, 1]} : vector<147x48xf32> to vector<48x32xf32>
    %7 = vector.extract_strided_slice %5 {offsets = [48, 0], sizes = [32, 32], strides = [1, 1]} : vector<147x48xf32> to vector<32x32xf32>
    %8 = vector.extract_strided_slice %5 {offsets = [80, 0], sizes = [32, 48], strides = [1, 1]} : vector<147x48xf32> to vector<32x48xf32>
    %9 = vector.extract_strided_slice %5 {offsets = [112, 0], sizes = [32, 16], strides = [1, 1]} : vector<147x48xf32> to vector<32x16xf32>
    %10 = vector.extract_strided_slice %5 {offsets = [144, 0], sizes = [3, 32], strides = [1, 1]} : vector<147x48xf32> to vector<3x32xf32>
    %11 = vector.extract_strided_slice %3 {offsets = [0, 0], sizes = [1, 32], strides = [1, 1]} : vector<4x48xf32> to vector<1x32xf32>
    %12 = vector.extract_strided_slice %3 {offsets = [1, 0], sizes = [1, 32], strides = [1, 1]} : vector<4x48xf32> to vector<1x32xf32>
    %13 = vector.extract_strided_slice %3 {offsets = [3, 0], sizes = [1, 48], strides = [1, 1]} : vector<4x48xf32> to vector<1x48xf32>
    %cst = arith.constant 1.000000e+00 : f32
    %14 = vector.broadcast %cst : f32 to vector<2x16xf32>
    %15 = arith.mulf %1, %14 : vector<2x16xf32>
    %16 = arith.mulf %0, %0 : vector<2x32xf32>
    %cst_9 = arith.constant dense<0.000000e+00> : vector<2xf32>
    %17 = vector.multi_reduction <add>, %16, %cst_9 [1] : vector<2x32xf32> to vector<2xf32>
    %18 = vector.shape_cast %17 : vector<2xf32> to vector<2x1xf32>
    %cst_10 = arith.constant 3.200000e+01 : f32
    %19 = vector.broadcast %cst_10 : f32 to vector<2x1xf32>
    %20 = arith.divf %18, %19 : vector<2x1xf32>
    %cst_11 = arith.constant 9.99999993E-9 : f32
    %21 = vector.broadcast %cst_11 : f32 to vector<2x1xf32>
    %22 = arith.addf %20, %21 : vector<2x1xf32>
    %23 = math.rsqrt %22 : vector<2x1xf32>
    %24 = vector.broadcast %23 : vector<2x1xf32> to vector<2x32xf32>
    %25 = arith.mulf %0, %24 : vector<2x32xf32>
    %26 = arith.mulf %15, %15 : vector<2x16xf32>
    %cst_12 = arith.constant dense<0.000000e+00> : vector<2xf32>
    %27 = vector.multi_reduction <add>, %26, %cst_12 [1] : vector<2x16xf32> to vector<2xf32>
    %28 = vector.shape_cast %27 : vector<2xf32> to vector<2x1xf32>
    %cst_13 = arith.constant 1.600000e+01 : f32
    %29 = vector.broadcast %cst_13 : f32 to vector<2x1xf32>
    %30 = arith.divf %28, %29 : vector<2x1xf32>
    %cst_14 = arith.constant 9.99999993E-9 : f32
    %31 = vector.broadcast %cst_14 : f32 to vector<2x1xf32>
    %32 = arith.addf %30, %31 : vector<2x1xf32>
    %33 = math.rsqrt %32 : vector<2x1xf32>
    %34 = vector.broadcast %33 : vector<2x1xf32> to vector<2x16xf32>
    %35 = arith.mulf %15, %34 : vector<2x16xf32>
    %36 = vector.extract_strided_slice %6 {offsets = [0, 0], sizes = [32, 32], strides = [1, 1]} : vector<48x32xf32> to vector<32x32xf32>
    %cst_15 = arith.constant dense<0.000000e+00> : vector<2x32xf32>
    %37 = tpu.matmul %25, %36, %cst_15 {dimension_numbers = #tpu.dot_dimension_numbers<[1], [0], [0], [1], [0, 0, 1, 1], [], []>} : vector<2x32xf32>, vector<32x32xf32>, vector<2x32xf32> -> vector<2x32xf32>
    %38 = vector.extract_strided_slice %6 {offsets = [32, 0], sizes = [16, 32], strides = [1, 1]} : vector<48x32xf32> to vector<16x32xf32>
    %cst_16 = arith.constant dense<0.000000e+00> : vector<2x32xf32>
    %39 = tpu.matmul %35, %38, %cst_16 {dimension_numbers = #tpu.dot_dimension_numbers<[1], [0], [0], [1], [0, 0, 1, 1], [], []>} : vector<2x16xf32>, vector<16x32xf32>, vector<2x32xf32> -> vector<2x32xf32>
    %40 = arith.addf %37, %39 : vector<2x32xf32>
    %41 = vector.broadcast %11 : vector<1x32xf32> to vector<2x32xf32>
    %42 = arith.addf %40, %41 : vector<2x32xf32>
    %cst_17 = arith.constant 0.000000e+00 : f32
    %43 = vector.broadcast %cst_17 : f32 to vector<2x32xf32>
    %44 = arith.cmpf oge, %42, %43 : vector<2x32xf32>
    %cst_18 = arith.constant 2.000000e-01 : f32
    %45 = vector.broadcast %cst_18 : f32 to vector<2x32xf32>
    %46 = arith.mulf %45, %42 : vector<2x32xf32>
    %47 = arith.select %44, %42, %46 : vector<2x32xi1>, vector<2x32xf32>
    %cst_19 = arith.constant 1.41421354 : f32
    %48 = vector.broadcast %cst_19 : f32 to vector<2x32xf32>
    %49 = arith.mulf %47, %48 : vector<2x32xf32>
    %cst_20 = arith.constant dense<0.000000e+00> : vector<2x32xf32>
    %50 = tpu.matmul %49, %7, %cst_20 {dimension_numbers = #tpu.dot_dimension_numbers<[1], [0], [0], [1], [0, 0, 1, 1], [], []>} : vector<2x32xf32>, vector<32x32xf32>, vector<2x32xf32> -> vector<2x32xf32>
    %51 = vector.broadcast %12 : vector<1x32xf32> to vector<2x32xf32>
    %52 = arith.addf %50, %51 : vector<2x32xf32>
    %cst_21 = arith.constant 0.000000e+00 : f32
    %53 = vector.broadcast %cst_21 : f32 to vector<2x32xf32>
    %54 = arith.cmpf oge, %52, %53 : vector<2x32xf32>
    %cst_22 = arith.constant 2.000000e-01 : f32
    %55 = vector.broadcast %cst_22 : f32 to vector<2x32xf32>
    %56 = arith.mulf %55, %52 : vector<2x32xf32>
    %57 = arith.select %54, %52, %56 : vector<2x32xi1>, vector<2x32xf32>
    %cst_23 = arith.constant 1.41421354 : f32
    %58 = vector.broadcast %cst_23 : f32 to vector<2x32xf32>
    %59 = arith.mulf %57, %58 : vector<2x32xf32>
    %cst_24 = arith.constant dense<0.000000e+00> : vector<2x48xf32>
    %60 = tpu.matmul %59, %8, %cst_24 {dimension_numbers = #tpu.dot_dimension_numbers<[1], [0], [0], [1], [0, 0, 1, 1], [], []>} : vector<2x32xf32>, vector<32x48xf32>, vector<2x48xf32> -> vector<2x48xf32>
    %61 = vector.broadcast %13 : vector<1x48xf32> to vector<2x48xf32>
    %62 = arith.addf %60, %61 : vector<2x48xf32>
    %63 = vector.extract_strided_slice %62 {offsets = [0, 0], sizes = [2, 16], strides = [1, 1]} : vector<2x48xf32> to vector<2x16xf32>
    %64 = vector.extract_strided_slice %62 {offsets = [0, 16], sizes = [2, 32], strides = [1, 1]} : vector<2x48xf32> to vector<2x32xf32>
    %65 = tpu.transpose %63, [1, 0] : vector<2x16xf32> -> vector<16x2xf32>
    %66 = vector.shape_cast %65 : vector<16x2xf32> to vector<16x2x1xf32>
    %67 = vector.shape_cast %4 : vector<16x256xf32> to vector<16x1x256xf32>
    %68 = vector.broadcast %66 : vector<16x2x1xf32> to vector<16x2x256xf32>
    %69 = vector.broadcast %67 : vector<16x1x256xf32> to vector<16x2x256xf32>
    %70 = arith.mulf %68, %69 : vector<16x2x256xf32>
    %71 = vector.shape_cast %70 : vector<16x2x256xf32> to vector<16x512xf32>
    %cst_25 = arith.constant dense<0.000000e+00> : vector<32x512xf32>
    %72 = tpu.matmul %9, %71, %cst_25 {dimension_numbers = #tpu.dot_dimension_numbers<[1], [0], [0], [1], [0, 0, 1, 1], [], []>} : vector<32x16xf32>, vector<16x512xf32>, vector<32x512xf32> -> vector<32x512xf32>
    %73 = arith.mulf %9, %9 : vector<32x16xf32>
    %74 = arith.mulf %63, %63 : vector<2x16xf32>
    %75 = tpu.transpose %74, [1, 0] : vector<2x16xf32> -> vector<16x2xf32>
    %cst_26 = arith.constant dense<0.000000e+00> : vector<32x2xf32>
    %76 = tpu.matmul %73, %75, %cst_26 {dimension_numbers = #tpu.dot_dimension_numbers<[1], [0], [0], [1], [0, 0, 1, 1], [], []>} : vector<32x16xf32>, vector<16x2xf32>, vector<32x2xf32> -> vector<32x2xf32>
    %cst_27 = arith.constant 9.99999993E-9 : f32
    %77 = vector.broadcast %cst_27 : f32 to vector<32x2xf32>
    %78 = arith.addf %76, %77 : vector<32x2xf32>
    %79 = math.rsqrt %78 : vector<32x2xf32>
    %80 = tpu.transpose %64, [1, 0] : vector<2x32xf32> -> vector<32x2xf32>
    %81 = arith.mulf %79, %80 : vector<32x2xf32>
    %cst_28 = arith.constant 0.000000e+00 : f32
    %82 = vector.broadcast %cst_28 : f32 to vector<32x512xf32>
    %83 = arith.cmpf oge, %72, %82 : vector<32x512xf32>
    %cst_29 = arith.constant 2.000000e-01 : f32
    %84 = vector.broadcast %cst_29 : f32 to vector<32x512xf32>
    %85 = arith.mulf %84, %72 : vector<32x512xf32>
    %86 = arith.select %83, %72, %85 : vector<32x512xi1>, vector<32x512xf32>
    %cst_30 = arith.constant 1.41421354 : f32
    %87 = vector.broadcast %cst_30 : f32 to vector<32x512xf32>
    %88 = arith.mulf %86, %87 : vector<32x512xf32>
    %89 = vector.shape_cast %88 : vector<32x512xf32> to vector<32x2x256xf32>
    %90 = vector.shape_cast %81 : vector<32x2xf32> to vector<32x2x1xf32>
    %91 = vector.broadcast %90 : vector<32x2x1xf32> to vector<32x2x256xf32>
    %92 = arith.mulf %89, %91 : vector<32x2x256xf32>
    %93 = vector.shape_cast %92 : vector<32x2x256xf32> to vector<32x512xf32>
    %cst_31 = arith.constant dense<0.000000e+00> : vector<3x512xf32>
    %94 = tpu.matmul %10, %93, %cst_31 {dimension_numbers = #tpu.dot_dimension_numbers<[1], [0], [0], [1], [0, 0, 1, 1], [], []>} : vector<3x32xf32>, vector<32x512xf32>, vector<3x512xf32> -> vector<3x512xf32>
    %c0_32 = arith.constant 0 : index
    %c0_33 = arith.constant 0 : index
    %95 = vector.load %arg5[%c0_32, %c0_33] : memref<3x512xf32, #tpu.memory_space<vmem>>, vector<3x512xf32>
    tpu.vector_store %arg5[%c0_32, %c0_33], %94 {strides = array<i32>} : memref<3x512xf32, #tpu.memory_space<vmem>>, vector<3x512xf32>,
    return
  }
}

</mosaic_0001>

<bundles_post_ra>
// kernel: _lambda_.1
= control target key start
LH: loop header
LB: loop body
LE: loop exit
PB: predicated region body
PF: predicated region fallthrough
CT: control target
= control target key end

     0   :  { %10 = vsyncpa [#allocation3], 0  ;;  %s3387_s0 = inlined_call_operand.hbm [shape: f32[2,32], index: 0, kind: input, shape index: {}]   ;;  %s3388_s1 = inlined_call_operand.hbm [shape: f32[2,16], index: 1, kind: input, shape index: {}]   ;;  %s3389_s2 = inlined_call_operand.hbm [shape: bf16[147,48], index: 2, kind: input, shape index: {}]   ;;  %s3390_s3 = inlined_call_operand.hbm [shape: f32[4,48], index: 3, kind: input, shape index: {}]   ;;  %s3391_s4 = inlined_call_operand.hbm [shape: f32[16,256], index: 4, kind: input, shape index: {}]   ;;  %s3392_s5 = inlined_call_operand.vmem [shape: f32[3,512], index: 5, kind: output, shape index: {}]  }
   0x1   :  { %11 = vsyncpa [#allocation5], 0  ;;  %s29_s20 = sshll.u32 %s3388_s1, 4  ;;  %s30_s20 = int_to_ptr.hbm [resolvable:$true] %s29_s20 }
   0x2   :  { %12 = vsyncpa [#allocation8], 0  ;;  %s2419_s21 = smov [#allocation4]   ;;  %s53_s25 = sshll.u32 %s3390_s3, 4  ;;  %s54_s25 = int_to_ptr.hbm [resolvable:$true] %s53_s25 }
   0x3   :  { %s31_s22 = sshll.u32 %s2419_s21, 4  ;;  %s2420_s26 = smov [#allocation7]   ;;  %s32_s22 = int_to_ptr.vmem [resolvable:$true] %s31_s22 }
   0x4   :  { %34 = dma.hbm_to_vmem [thread:$0]  %s30_s20, 32, %s32_s22, [#allocation5]  }
   0x5   :  { %s55_s27 = sshll.u32 %s2420_s26, 4  ;;  %s18_s30 = sshll.u32 %s3387_s0, 4  ;;  %s56_s27 = int_to_ptr.vmem [resolvable:$true] %s55_s27  ;;  %s19_s30 = int_to_ptr.hbm [resolvable:$true] %s18_s30 }
   0x6   :  { %58 = dma.hbm_to_vmem [thread:$0]  %s54_s25, 64, %s56_s27, [#allocation8]  }
   0x7   :  { %s39_s7 = sshll.u32 %s3389_s2, 4  ;;  %s2421_s8 = smov [#allocation2]   ;;  %s40_s7 = int_to_ptr.hbm [resolvable:$true] %s39_s7 }
   0x8   :  { %s20_s9 = sshll.u32 %s2421_s8, 4  ;;  %s2422_s3 = smov [#allocation6]   ;;  %s21_s9 = int_to_ptr.vmem [resolvable:$true] %s20_s9 }
   0x9   :  { %23 = dma.hbm_to_vmem [thread:$0]  %s19_s30, 32, %s21_s9, [#allocation3]  }
   0xa   :  { %s41_s10 = sshll.u32 %s2422_s3, 4  ;;  %s2423_s11 = smov 64   ;;  %s42_s10 = int_to_ptr.vmem [resolvable:$true] %s41_s10 }
   0xb   :  { %s2424_s12 = smov 4   ;;  %s63_s14 = sshll.u32 %s3391_s4, 4  ;;  %s64_s14 = int_to_ptr.hbm [resolvable:$true] %s63_s14 }
   0xc   :  { %47 = dma.hbm_to_vmem [thread:$0]  %s40_s7, 1216, %s42_s10, [#allocation5], %s2423_s11, %s2423_s11, %s2424_s12  }
   0xd   :  { %s2425_s15 = smov [#allocation9]   ;;  %s2426_s2 = smov 256  }
   0xe   :  { %s65_s16 = sshll.u32 %s2425_s15, 4  ;;  %s2427_s17 = smov 16   ;;  %s66_s16 = int_to_ptr.vmem [resolvable:$true] %s65_s16 }
   0xf   :  { %71 = dma.hbm_to_vmem [thread:$0]  %s64_s14, 512, %s66_s16, [#allocation8], %s2426_s2, %s2426_s2, %s2427_s17  }
  0x10   :  { %2413 = dma.done.wait [#allocation3], 32  }
  0x11   :  { %2414 = vsyncadd [#allocation3], 4294967264 }
  0x12   :  { %2415 = dma.done.wait [#allocation5], 1248  }
  0x13   :  { %2416 = vsyncadd [#allocation5], 4294966048 }
  0x14   :  { %2417 = dma.done.wait [#allocation8], 576  }
  0x15   :  { %2418 = vsyncadd [#allocation8], 4294966720  ;;  %v2478_v0 = vld [vmem:[#allocation4] sm:$0x3]  ;;  %vm163_vm0 = vcmask 123904   ;;  %vm138_vm1 = vcmask 254976  }
  0x16   :  { %v162_v1 = vmul.f32 %v2478_v0, %v2478_v0  ;;  %v2482_v2 = vld [vmem:[#allocation2] sm:$0x3]  ;;  %v2428_v6 = vmov 16.0   ;;  %v2429_v8 = vmov 32.0   ;;  %v2252_v12 = vld [vmem:[#allocation6 + $0x10] sm:$0xff]   ;;  %v2251_v17 = vld [vmem:[#allocation6 + $0x8] sm:$0xff]  }
  0x17   :  { %v137_v4 = vmul.f32 %v2482_v2, %v2482_v2  ;;  %2277 = vrcp.f32 %v2428_v6  ;;  %v2226_v13 = vunpack.c.h.bf16 %v2252_v12  ;;  %v2225_v16 = vunpack.c.l.bf16 %v2252_v12  ;;  %v2216_v22 = vld [vmem:[#allocation6] sm:$0xff]   ;;  %v2253_v54 = vld [vmem:[#allocation6 + $0x18] sm:$0xff]   ;;  %v113_v57 = vld [vmem:[#allocation7] sm:$0xf]  ;;  %s2430_s4 = smov 112  }
  0x18   :  { %v164_v3 = vsel %vm163_vm0, %v162_v1, 0.0  ;;  %2279 = vrcp.f32 %v2429_v8  ;;  %v2222_v18 = vunpack.c.h.bf16 %v2251_v17  ;;  %v2221_v21 = vunpack.c.l.bf16 %v2251_v17  ;;  %v2254_v51 = vld [vmem:[#allocation6 + $0x20] sm:$0xff]  }
  0x19   :  { %165 = vadd.xlane.f32.xlu0 %v164_v3  ;;  %v139_v5 = vsel %vm138_vm1, %v137_v4, 0.0  ;;  %205 = vmatpush.msra.mxu2 %v2226_v13  ;;  %v2218_v23 = vunpack.c.h.bf16 %v2216_v22  ;;  %v2217_v24 = vunpack.c.l.bf16 %v2216_v22  ;;  %vm187_vm7 = vcmask 130048  }
  0x1a   :  { %227 = vmatpush.msra.mxu1 %v2222_v18  ;;  %vm211_vm11 = vcmask 261120   ;;  %v2234_v52 = vunpack.c.h.bf16 %v2254_v51  ;;  %v2233_v53 = vunpack.c.l.bf16 %v2254_v51  ;;  %v2230_v55 = vunpack.c.h.bf16 %v2253_v54 }
  0x1b   :  { %206 = vmatpush.msra.mxu2 %v2225_v16  ;;  %v2229_v56 = vunpack.c.l.bf16 %v2253_v54  ;;  %v235_v58 = vperm.slane %v113_v57, 0  ;;  %v241_v8 = vperm.slane %v113_v57, 1  ;;  %v269_v16 = vperm.slane %v113_v57, 3 }
  0x1c   :  { %228 = vmatpush.msra.mxu1 %v2221_v21  ;;  %vm463_vm14 = vcmask 1046528   ;;  %vm451_vm15 = vcmask 1043459   ;;  %vm457_vm0 = vcmask 1045509   ;;  %vm460_vm1 = vcmask 1046534  }
  0x1d   :  { %v2278_v7 = vpop.eup %2277  ;;  %257 = vmatpush.msrb.mxu2 %v2234_v52  ;;  %v117_v52 = vld [vmem:[#allocation9 + $0x18] sm:$0xff] }
  0x1e   :  { %v168_v9 = vmul.f32 16.0, %v2278_v7  ;;  %v2280_v11 = vpop.eup %2279  ;;  %vm172_vm2 = vweird.f32 %v2278_v7  ;;  %229 = vmatpush.msra.mxu1 %v2218_v23 }
  0x1f   :  { %v143_v15 = vmul.f32 32.0, %v2280_v11  ;;  %vm147_vm3 = vweird.f32 %v2280_v11  ;;  %258 = vmatpush.msrb.mxu2 %v2233_v53 }
  0x20   :  { %v169_v10 = vsub.f32 1.0, %v168_v9  ;;  %230 = vmatpush.msra.mxu1 %v2217_v24 }
  0x21   :  { %140 = vadd.xlane.f32.xlu0 %v139_v5  ;;  %v144_v20 = vsub.f32 1.0, %v143_v15  ;;  %259 = vmatpush.msrb.mxu2 %v2230_v55  ;;  %v2255_v5 = vld [vmem:[#allocation6 + $0x28] sm:$0xff]  }
  0x22   :  { %v170_v14 = vmul.f32 %v2278_v7, %v169_v10  ;;  %v2238_v6 = vunpack.c.h.bf16 %v2255_v5 }
  0x23   :  { %v145_v26 = vmul.f32 %v2280_v11, %v144_v20  ;;  %260 = vmatpush.msrb.mxu2 %v2229_v56  ;;  %v2431_v56 = vmov 1983009808  }
  0x24   :  { %v171_v19 = vadd.f32 %v2278_v7, %v170_v14  ;;  %v326_v14 = vlaneseq  ;;  %v581_v57 = vunpack.c.l.s4 %v2431_v56 }
  0x25   :  { %v146_v29 = vadd.f32 %v2280_v11, %v145_v26 }
  0x26   :  { %v173_v25 = vsel %vm172_vm2, %v2278_v7, %v171_v19  ;;  %v2237_v7 = vunpack.c.l.bf16 %v2255_v5  ;;  %v327_v15 = vshrl.u32 %v326_v14, 7  ;;  %vm445_vm2 = vcmask 1041409  }
  0x27   :  { %v148_v31 = vsel %vm147_vm3, %v2280_v11, %v146_v29  ;;  %vm448_vm3 = vcmask 1042434  }
  0x28   :  { %2276 = vset.pattern.permute.xlu0 %v327_v15  ;;  %2275 = vset.pattern.permute.xlu2 %v327_v15 }
  0x8c   :  { %v166_v27 = vpop.xlane.xlu0 %165 }
  0x8d   :  { %v174_v28 = vmul.f32 %v173_v25, %v166_v27 }
  0x8f   :  { %v175_v30 = vadd.f32 1e-08, %v174_v28 }
  0x91   :  { %2281 = vrsqrt.f32 %v175_v30  ;;  %vm182_vm5 = vweird.f32 %v175_v30 }
  0x94   :  { %v141_v32 = vpop.xlane.xlu0 %140 }
  0x95   :  { %v149_v33 = vmul.f32 %v148_v31, %v141_v32 }
  0x97   :  { %v2282_v34 = vpop.eup %2281  ;;  %v150_v35 = vadd.f32 1e-08, %v149_v33 }
  0x98   :  { %v177_v36 = vmul.f32 %v2282_v34, %v175_v30  ;;  %vm183_vm4 = vweird.f32 %v2282_v34 }
  0x99   :  { %2283 = vrsqrt.f32 %v150_v35  ;;  %vm184_vm6 = vmor %vm182_vm5, %vm183_vm4  ;;  %vm157_vm9 = vweird.f32 %v150_v35  ;;  %vm454_vm4 = vcmask 1044484   ;;  %vm578_vm5 = vcmask 1047556  }
  0x9a   :  { %v178_v37 = vmul.f32 %v2282_v34, %v177_v36 }
  0x9c   :  { %v179_v38 = vmul.f32 0.5, %v178_v37 }
  0x9e   :  { %v180_v39 = vsub.f32 1.5, %v179_v38 }
  0x9f   :  { %v2284_v40 = vpop.eup %2283 }
  0xa0   :  { %v152_v41 = vmul.f32 %v2284_v40, %v150_v35  ;;  %v181_v42 = vmul.f32 %v2282_v34, %v180_v39  ;;  %vm158_vm8 = vweird.f32 %v2284_v40 }
  0xa1   :  { %vm159_vm10 = vmor %vm157_vm9, %vm158_vm8 }
  0xa2   :  { %v153_v43 = vmul.f32 %v2284_v40, %v152_v41  ;;  %v185_v44 = vsel %vm184_vm6, %v2282_v34, %v181_v42  ;;  %vm443_vm6 = vcmask 1040384  }
  0xa3   :  { %v186_v45 = vmul.f32 %v185_v44, %v2478_v0  ;;  %v2504_v44 = vld [vmem:[#allocation9] sm:$0xff] }
  0xa4   :  { %v154_v46 = vmul.f32 0.5, %v153_v43 }
  0xa5   :  { %2186 = vmatmul.msk.f32.vlgmr.msra.gmra.mxu2 %vm187_vm7, %v186_v45 }
  0xa6   :  { %v155_v47 = vsub.f32 1.5, %v154_v46 }
  0xa8   :  { %v156_v48 = vmul.f32 %v2284_v40, %v155_v47 }
  0xaa   :  { %v160_v49 = vsel %vm159_vm10, %v2284_v40, %v156_v48  ;;  %v115_v40 = vld [vmem:[#allocation9 + $0x8] sm:$0xff] }
  0xab   :  { %v161_v50 = vmul.f32 %v160_v49, %v2482_v2  ;;  %v2256_v2 = vld [vmem:[#allocation6 + $0x30] sm:$0xff]   ;;  %v2502_v43 = vrot.slane %v115_v40, 7 }
  0xac   :  { %v2242_v3 = vunpack.c.h.bf16 %v2256_v2  ;;  %v2241_v4 = vunpack.c.l.bf16 %v2256_v2 }
  0xad   :  { %2187 = vmatmul.msk.f32.vlgmr.msra.gmra.mxu1 %vm211_vm11, %v161_v50  ;;  %v464_v45 = vsel %vm463_vm14, %v2502_v43, %v2504_v44  ;;  %v452_v46 = vsel %vm451_vm15, %v2504_v44, %v2502_v43  ;;  %v458_v49 = vsel %vm457_vm0, %v2504_v44, %v2502_v43  ;;  %v461_v51 = vsel %vm460_vm1, %v2504_v44, %v2502_v43 }
  0xae   :  { %285 = vmatpush.msra.mxu3 %v2242_v3  ;;  %v465_v50 = vrot.slane %v464_v45, 7  ;;  %v453_v53 = vrot.slane %v452_v46, 3  ;;  %v446_v54 = vsel %vm445_vm2, %v2504_v44, %v2502_v43  ;;  %v459_v55 = vrot.slane %v458_v49, 5 }
  0xb0   :  { %286 = vmatpush.msra.mxu3 %v2241_v4  ;;  %v487_v2 = vperm.slane %v453_v53, 0  ;;  %v488_v3 = vperm.slane %v453_v53, 1  ;;  %v491_v5 = vperm.slane %v459_v55, 0 }
  0xb2   :  { %287 = vmatpush.msra.mxu3 %v2238_v6  ;;  %v492_v6 = vperm.slane %v459_v55, 1 }
  0xb4   :  { %288 = vmatpush.msra.mxu3 %v2237_v7  ;;  %v2535_v7 = vunpack.c.0.s8 %v581_v57 }
 0x128   :  { %v208_v59 = vpop.f32.mrf.mxu2 }
 0x12a   :  { %v232_v60 = vpop.f32.mrf.mxu1 }
 0x12b   :  { %v233_v61 = vadd.f32 %v232_v60, %v208_v59  ;;  %v462_v59 = vrot.slane %v461_v51, 6  ;;  %v2528_v60 = vrot.slane %v117_v52, 7 }
 0x12d   :  { %v236_v62 = vadd.f32 %v235_v58, %v233_v61  ;;  %v449_v58 = vsel %vm448_vm3, %v2504_v44, %v2502_v43  ;;  %v495_v61 = vperm.slane %v465_v50, 0 }
 0x12e   :  { %v450_v4 = vrot.slane %v449_v58, 2 }
 0x12f   :  { %vm237_vm12 = vcmp.ge.f32.partialorder %v236_v62, 0.0  ;;  %v238_v63 = vmul.f32 0.2, %v236_v62 }
 0x131   :  { %v239_v0 = vsel %vm237_vm12, %v236_v62, %v238_v63  ;;  %v496_v62 = vperm.slane %v465_v50, 1  ;;  %v447_v63 = vrot.slane %v446_v54, 1 }
 0x132   :  { %v240_v1 = vmul.f32 1.4142135, %v239_v0  ;;  %v455_v0 = vsel %vm454_vm4, %v2504_v44, %v2502_v43 }
 0x134   :  { %2188 = vmatmul.msk.f32.vlgmr.msrb.gmra.mxu2 %vm211_vm11, %v240_v1  ;;  %v2533_v1 = vld [vmem:[#allocation9 + $0x10] sm:$0xff] }
 0x135   :  { %v467_v54 = vsel %vm445_vm2, %v2533_v1, %v2528_v60 }
 0x1b7   :  { %v262_v9 = vpop.f32.mrf.mxu2 }
 0x1b8   :  { %v263_v10 = vadd.f32 %v262_v9, %v241_v8 }
 0x1ba   :  { %vm265_vm13 = vcmp.ge.f32.partialorder %v263_v10, 0.0  ;;  %v266_v11 = vmul.f32 0.2, %v263_v10 }
 0x1bc   :  { %v267_v12 = vsel %vm265_vm13, %v263_v10, %v266_v11  ;;  %v493_v10 = vperm.slane %v462_v59, 0  ;;  %v494_v11 = vperm.slane %v462_v59, 1 }
 0x1bd   :  { %v268_v13 = vmul.f32 1.4142135, %v267_v12  ;;  %v456_v12 = vrot.slane %v455_v0, 4 }
 0x1bf   :  { %2189 = vmatmul.msk.f32.vlgmr.msra.gmra.mxu3 %vm211_vm11, %v268_v13  ;;  %v479_v13 = vsel %vm463_vm14, %v2528_v60, %v2533_v1 }
 0x242   :  { %v290_v17 = vpop.f32.mrf.mxu3 }
 0x243   :  { %v2492_v18 = vadd.f32 %v290_v17, %v269_v16  ;;  %v484_v16 = vperm.slane %v447_v63, 1  ;;  %v475_v17 = vsel %vm457_vm0, %v2533_v1, %v2528_v60 }
 0x245   :  { %293 = vxpose.xlu1.b32.start.end [1/1] (short) (narrow) %v2492_v18, 16 }
 0x298   :  { %2274 = vset.pattern.permute.xlu1 %v327_v15  ;;  %v483_v15 = vperm.slane %v447_v63, 0  ;;  %v444_v63 = vsel %vm443_vm6, %v2504_v44, %v2502_v43  ;;  %v473_v44 = vsel %vm454_vm4, %v2533_v1, %v2528_v60 }
 0x299   :  { %v481_v43 = vperm.slane %v444_v63, 0 }
 0x2e9   :  { %v309_v19 = vpop.trf.xlu1 }
 0x2ea   :  { %v374_v20 = vperm.slane %v309_v19, 7  ;;  %v332_v21 = vperm.slane %v309_v19, 1  ;;  %v346_v23 = vperm.slane %v309_v19, 3  ;;  %v353_v24 = vperm.slane %v309_v19, 4 }
 0x2eb   :  { %v360_v27 = vperm.slane %v309_v19, 5  ;;  %v367_v29 = vperm.slane %v309_v19, 6  ;;  %v339_v30 = vperm.slane %v309_v19, 2  ;;  %v325_v31 = vperm.slane %v309_v19, 0 }
 0x2ec   :  { %379 = vperm.xlu2 %2275, %v374_v20   ;;  %337 = vperm.xlu0 %2276, %v332_v21   ;;  %v485_v20 = vperm.slane %v450_v4, 0  ;;  %v471_v21 = vsel %vm451_vm15, %v2533_v1, %v2528_v60 }
 0x2f1   :  { %v310_v22 = vpop.trf.xlu1 }
 0x2f2   :  { %v430_v25 = vperm.slane %v310_v22, 7  ;;  %v416_v26 = vperm.slane %v310_v22, 5  ;;  %v395_v28 = vperm.slane %v310_v22, 2  ;;  %v402_v32 = vperm.slane %v310_v22, 3 }
 0x2f3   :  { %v423_v33 = vperm.slane %v310_v22, 6  ;;  %v388_v34 = vperm.slane %v310_v22, 1  ;;  %v409_v35 = vperm.slane %v310_v22, 4  ;;  %v381_v36 = vperm.slane %v310_v22, 0 }
 0x2f4   :  { %351 = vperm.xlu2 %2275, %v346_v23   ;;  %358 = vperm.xlu0 %2276, %v353_v24   ;;  %v2432_v22 = vmov 1934713408  }
 0x2f5   :  { %435 = vperm.xlu1 %2274, %v430_v25   ;;  %v605_v23 = vunpack.c.l.s4 %v2432_v22  ;;  %v486_v25 = vperm.slane %v450_v4, 1  ;;  %v482_v22 = vperm.slane %v444_v63, 1 }
 0x2f7   :  { %v2558_v45 = vunpack.c.0.s8 %v605_v23 }
 0x2fc   :  { %365 = vperm.xlu2 %2275, %v360_v27   ;;  %421 = vperm.xlu0 %2276, %v416_v26   ;;  %v480_v26 = vrot.slane %v479_v13, 7  ;;  %v477_v27 = vsel %vm460_vm1, %v2533_v1, %v2528_v60 }
 0x2fd   :  { %v478_v40 = vrot.slane %v477_v27, 6 }
 0x2fe   :  { %v512_v49 = vperm.slane %v480_v26, 1 }
 0x304   :  { %372 = vperm.xlu2 %2275, %v367_v29   ;;  %400 = vperm.xlu0 %2276, %v395_v28   ;;  %v489_v29 = vperm.slane %v456_v12, 0 }
 0x30c   :  { %344 = vperm.xlu2 %2275, %v339_v30   ;;  %330 = vperm.xlu0 %2276, %v325_v31   ;;  %v490_v30 = vperm.slane %v456_v12, 1  ;;  %v476_v31 = vrot.slane %v475_v17, 5  ;;  %v510_v12 = vperm.slane %v478_v40, 1 }
 0x30e   :  { %v507_v52 = vperm.slane %v476_v31, 0  ;;  %v508_v56 = vperm.slane %v476_v31, 1 }
 0x314   :  { %407 = vperm.xlu2 %2275, %v402_v32  }
 0x31c   :  { %428 = vperm.xlu2 %2275, %v423_v33  }
 0x324   :  { %393 = vperm.xlu2 %2275, %v388_v34   ;;  %v472_v34 = vrot.slane %v471_v21, 3 }
 0x326   :  { %v504_v57 = vperm.slane %v472_v34, 1 }
 0x32c   :  { %414 = vperm.xlu2 %2275, %v409_v35   ;;  %v469_v35 = vsel %vm448_vm3, %v2533_v1, %v2528_v60 }
 0x32d   :  { %v470_v53 = vrot.slane %v469_v35, 2 }
 0x32f   :  { %v2575_v13 = vperm.slane %v470_v53, 0 }
 0x334   :  { %386 = vperm.xlu2 %2275, %v381_v36  }
 0x33c   :  { %956 = vrot.lane.b32.xlu2 %v2492_v18, %s2430_s4 }
 0x346   :  { %v380_v37 = vpop.permute.xlu2 %379 }
 0x347   :  { %v559_v14 = vmul.f32 %v495_v61, %v380_v37  ;;  %v560_v19 = vmul.f32 %v496_v62, %v380_v37  ;;  %v509_v62 = vperm.slane %v478_v40, 0 }
 0x349   :  { %v596_v32 = vrot.slane %v559_v14, 4  ;;  %v676_v36 = vrot.slane %v560_v19, 4  ;;  %v2577_v14 = vperm.slane %v470_v53, 1 }
 0x34e   :  { %v2496_v38 = vpop.permute.xlu2 %351 }
 0x34f   :  { %v551_v33 = vmul.f32 %v487_v2, %v2496_v38  ;;  %v552_v37 = vmul.f32 %v488_v3, %v2496_v38  ;;  %v503_v38 = vperm.slane %v472_v34, 0 }
 0x351   :  { %v584_v55 = vrot.slane %v551_v33, 4  ;;  %v664_v59 = vrot.slane %v552_v37, 4 }
 0x356   :  { %v366_v39 = vpop.permute.xlu2 %365 }
 0x357   :  { %v555_v24 = vmul.f32 %v491_v5, %v366_v39  ;;  %v556_v28 = vmul.f32 %v492_v6, %v366_v39  ;;  %v511_v39 = vperm.slane %v480_v26, 0  ;;  %v468_v5 = vrot.slane %v467_v54, 1 }
 0x359   :  { %v597_v46 = vsel %vm578_vm5, %v596_v32, %v555_v24  ;;  %v677_v51 = vsel %vm578_vm5, %v676_v36, %v556_v28  ;;  %v499_v24 = vperm.slane %v468_v5, 0  ;;  %v474_v28 = vrot.slane %v473_v44, 4 }
 0x35a   :  { %v601_v61 = vperm.slane %v597_v46, %v2535_v7  ;;  %v681_v0 = vperm.slane %v677_v51, %v2535_v7  ;;  %v500_v33 = vperm.slane %v468_v5, 1 }
 0x35e   :  { %v2498_v41 = vpop.permute.xlu2 %372  ;;  %v2500_v42 = vpop.permute.xlu0 %337 }
 0x35f   :  { %v557_v2 = vmul.f32 %v493_v10, %v2498_v41  ;;  %v547_v3 = vmul.f32 %v483_v15, %v2500_v42  ;;  %v548_v6 = vmul.f32 %v484_v16, %v2500_v42  ;;  %v558_v17 = vmul.f32 %v494_v11, %v2498_v41 }
 0x360   :  { %v2584_v10 = vrot.slane %v601_v61, 4  ;;  %v2586_v42 = vrot.slane %v681_v0, 4  ;;  %v466_v0 = vsel %vm443_vm6, %v2533_v1, %v2528_v60 }
 0x361   :  { %v590_v16 = vrot.slane %v557_v2, 4  ;;  %v585_v23 = vsel %vm578_vm5, %v584_v55, %v547_v3  ;;  %v665_v41 = vsel %vm578_vm5, %v664_v59, %v548_v6  ;;  %v497_v44 = vperm.slane %v466_v0, 0 }
 0x362   :  { %v589_v40 = vperm.slane %v585_v23, %v2535_v7  ;;  %v669_v46 = vperm.slane %v665_v41, %v2535_v7 }
 0x366   :  { %v2512_v47 = vpop.permute.xlu2 %344  ;;  %v2514_v48 = vpop.permute.xlu0 %358 }
 0x367   :  { %v436_v4 = vpop.permute.xlu1 %435  ;;  %v553_v19 = vmul.f32 %v489_v29, %v2514_v48  ;;  %v549_v11 = vmul.f32 %v485_v20, %v2512_v47  ;;  %v554_v27 = vmul.f32 %v490_v30, %v2514_v48  ;;  %v670_v29 = vrot.slane %v558_v17, 4 }
 0x368   :  { %v575_v15 = vmul.f32 %v511_v39, %v436_v4  ;;  %v576_v21 = vmul.f32 %v512_v49, %v436_v4  ;;  %v550_v31 = vmul.f32 %v486_v25, %v2512_v47  ;;  %v505_v47 = vperm.slane %v474_v28, 0 }
 0x369   :  { %v591_v32 = vsel %vm578_vm5, %v590_v16, %v553_v19  ;;  %v577_v30 = vrot.slane %v549_v11, 4  ;;  %v671_v49 = vsel %vm578_vm5, %v670_v29, %v554_v27  ;;  %v506_v25 = vperm.slane %v474_v28, 1 }
 0x36a   :  { %v636_v34 = vrot.slane %v575_v15, 4  ;;  %v716_v35 = vrot.slane %v576_v21, 4  ;;  %v658_v51 = vrot.slane %v550_v31, 4  ;;  %v595_v53 = vperm.slane %v591_v32, %v2535_v7 }
 0x36b   :  { %v498_v15 = vperm.slane %v466_v0, 1  ;;  %v602_v27 = vrot.slane %v589_v40, 4  ;;  %v682_v28 = vrot.slane %v669_v46, 4 }
 0x36c   :  { %v609_v29 = vsel %vm578_vm5, %v2584_v10, %v595_v53 }
 0x36d   :  { %v613_v10 = vperm.slane %v609_v29, %v2558_v45 }
 0x36e   :  { %v2537_v8 = vpop.permute.xlu0 %421  ;;  %v2539_v9 = vpop.permute.xlu2 %407 }
 0x36f   :  { %v571_v36 = vmul.f32 %v507_v52, %v2537_v8  ;;  %v572_v37 = vmul.f32 %v508_v56, %v2537_v8  ;;  %v567_v54 = vmul.f32 %v503_v38, %v2539_v9  ;;  %v568_v52 = vmul.f32 %v504_v57, %v2539_v9 }
 0x371   :  { %v637_v8 = vsel %vm578_vm5, %v636_v34, %v571_v36  ;;  %v717_v55 = vsel %vm578_vm5, %v716_v35, %v572_v37  ;;  %v624_v5 = vrot.slane %v567_v54, 4  ;;  %v704_v6 = vrot.slane %v568_v52, 4 }
 0x372   :  { %v641_v9 = vperm.slane %v637_v8, %v2535_v7  ;;  %v721_v57 = vperm.slane %v717_v55, %v2535_v7 }
 0x376   :  { %v429_v50 = vpop.permute.xlu2 %428  ;;  %v2565_v58 = vpop.permute.xlu0 %400 }
 0x377   :  { %v573_v20 = vmul.f32 %v509_v62, %v429_v50  ;;  %v574_v39 = vmul.f32 %v510_v12, %v429_v50  ;;  %v675_v50 = vperm.slane %v671_v49, %v2535_v7  ;;  %v565_v21 = vmul.f32 %v2575_v13, %v2565_v58 }
 0x379   :  { %v630_v61 = vrot.slane %v573_v20, 4  ;;  %v710_v62 = vrot.slane %v574_v39, 4  ;;  %v689_v13 = vsel %vm578_vm5, %v2586_v42, %v675_v50  ;;  %v618_v34 = vrot.slane %v565_v21, 4 }
 0x37a   :  { %v693_v42 = vperm.slane %v689_v13, %v2558_v45 }
 0x37c   :  { %v694_v0 = vrot.slane %v693_v42, 4 }
 0x37e   :  { %v394_v26 = vpop.permute.xlu2 %393  ;;  %v331_v48 = vpop.permute.xlu0 %330 }
 0x37f   :  { %v545_v56 = vmul.f32 %v481_v43, %v331_v48  ;;  %v546_v59 = vmul.f32 %v482_v22, %v331_v48  ;;  %v563_v2 = vmul.f32 %v499_v24, %v394_v26  ;;  %v564_v3 = vmul.f32 %v500_v33, %v394_v26 }
 0x380   :  { %v566_v22 = vmul.f32 %v2577_v14, %v2565_v58  ;;  %v648_v24 = vrot.slane %v641_v9, 4  ;;  %v728_v26 = vrot.slane %v721_v57, 4 }
 0x381   :  { %v579_v12 = vsel %vm578_vm5, %v577_v30, %v545_v56  ;;  %v659_v17 = vsel %vm578_vm5, %v658_v51, %v546_v59  ;;  %v625_v16 = vsel %vm578_vm5, %v624_v5, %v563_v2  ;;  %v705_v23 = vsel %vm578_vm5, %v704_v6, %v564_v3 }
 0x382   :  { %v583_v41 = vperm.slane %v579_v12, %v2535_v7  ;;  %v663_v11 = vperm.slane %v659_v17, %v2535_v7  ;;  %v629_v58 = vperm.slane %v625_v16, %v2535_v7  ;;  %v709_v14 = vperm.slane %v705_v23, %v2535_v7 }
 0x383   :  { %v698_v35 = vrot.slane %v566_v22, 4 }
 0x384   :  { %v603_v40 = vsel %vm578_vm5, %v602_v27, %v583_v41  ;;  %v683_v46 = vsel %vm578_vm5, %v682_v28, %v663_v11  ;;  %v642_v49 = vrot.slane %v629_v58, 4 }
 0x385   :  { %v607_v52 = vperm.slane %v603_v40, %v2558_v45  ;;  %v687_v8 = vperm.slane %v683_v46, %v2558_v45 }
 0x386   :  { %v415_v63 = vpop.permute.xlu2 %414 }
 0x387   :  { %v569_v38 = vmul.f32 %v505_v47, %v415_v63  ;;  %v570_v4 = vmul.f32 %v506_v25, %v415_v63  ;;  %v722_v47 = vrot.slane %v709_v14, 4  ;;  %v614_v63 = vrot.slane %v613_v10, 4 }
 0x388   :  { %v616_v5 = vrot.slane %v607_v52, 4  ;;  %v695_v6 = vsel %vm578_vm5, %v694_v0, %v687_v8 }
 0x389   :  { %v631_v19 = vsel %vm578_vm5, %v630_v61, %v569_v38  ;;  %v711_v43 = vsel %vm578_vm5, %v710_v62, %v570_v4  ;;  %v2257_v61 = vld [vmem:[#allocation6 + $0x38] sm:$0xff]   ;;  %v615_v9 = vsel %vm578_vm5, %v614_v63, %v607_v52 }
 0x38a   :  { %v635_v60 = vperm.slane %v631_v19, %v2535_v7  ;;  %v715_v1 = vperm.slane %v711_v43, %v2535_v7  ;;  %v2245_v57 = vunpack.c.l.bf16 %v2257_v61  ;;  %v696_v19 = vrot.slane %v687_v8, 4 }
 0x38b   :  { %v870_v43 = vmul.f32 %v2492_v18, %v2492_v18  ;;  %v2258_v18 = vld [vmem:[#allocation6 + $0x40] sm:$0xff]  }
 0x38c   :  { %v649_v32 = vsel %vm578_vm5, %v648_v24, %v635_v60  ;;  %v729_v33 = vsel %vm578_vm5, %v728_v26, %v715_v1  ;;  %v617_v60 = vsel %vm578_vm5, %v613_v10, %v616_v5  ;;  %v697_v1 = vsel %vm578_vm5, %v693_v42, %v696_v19 }
 0x38d   :  { %v653_v48 = vperm.slane %v649_v32, %v2558_v45  ;;  %v733_v30 = vperm.slane %v729_v33, %v2558_v45  ;;  %v2250_v21 = vunpack.c.h.bf16 %v2258_v18  ;;  %v866_v22 = vmul.f32 %v2245_v57, %v2245_v57 }
 0x38e   :  { %v387_v31 = vpop.permute.xlu2 %386 }
 0x38f   :  { %v561_v36 = vmul.f32 %v497_v44, %v387_v31  ;;  %v562_v37 = vmul.f32 %v498_v15, %v387_v31  ;;  %v654_v56 = vrot.slane %v653_v48, 4  ;;  %v734_v50 = vrot.slane %v733_v30, 4 }
 0x390   :  { %v2246_v44 = vunpack.c.h.bf16 %v2257_v61  ;;  %v2249_v15 = vunpack.c.l.bf16 %v2258_v18  ;;  %v869_v24 = vmul.f32 %v2250_v21, %v2250_v21 }
 0x391   :  { %v619_v20 = vsel %vm578_vm5, %v618_v34, %v561_v36  ;;  %v699_v39 = vsel %vm578_vm5, %v698_v35, %v562_v37 }
 0x392   :  { %v623_v25 = vperm.slane %v619_v20, %v2535_v7  ;;  %v703_v51 = vperm.slane %v699_v39, %v2535_v7  ;;  %v867_v16 = vmul.f32 %v2246_v44, %v2246_v44  ;;  %v868_v23 = vmul.f32 %v2249_v15, %v2249_v15 }
 0x394   :  { %v643_v53 = vsel %vm578_vm5, %v642_v49, %v623_v25  ;;  %v723_v54 = vsel %vm578_vm5, %v722_v47, %v703_v51 }
 0x395   :  { %v647_v55 = vperm.slane %v643_v53, %v2558_v45  ;;  %v727_v59 = vperm.slane %v723_v54, %v2558_v45 }
 0x396   :  { %v957_v62 = vpop.permute.xlu2 %956 }
 0x397   :  { %959 = vxpose.xlu0.b32.start.end [1/1] (short) (narrow) %v957_v62, 32  ;;  %v655_v2 = vsel %vm578_vm5, %v654_v56, %v647_v55  ;;  %v656_v3 = vrot.slane %v647_v55, 4  ;;  %v735_v38 = vsel %vm578_vm5, %v734_v50, %v727_v59  ;;  %v736_v4 = vrot.slane %v727_v59, 4 }
 0x398   :  { %764 = vmatpush.msra.mxu0 %v655_v2  ;;  %793 = vmatpush.msrb.mxu1 %v735_v38 }
 0x399   :  { %v657_v12 = vsel %vm578_vm5, %v653_v48, %v656_v3  ;;  %v737_v17 = vsel %vm578_vm5, %v733_v30, %v736_v4 }
 0x39a   :  { %765 = vmatpush.msra.mxu0 %v615_v9  ;;  %794 = vmatpush.msrb.mxu1 %v695_v6 }
 0x39b   :  { %822 = vmatpush.msra.mxu2 %v657_v12  ;;  %851 = vmatpush.msrb.mxu3 %v737_v17 }
 0x39c   :  { %2190 = vmatmul.msk.f32.vlgmr.msra.gmra.mxu0 %vm187_vm7, %v2245_v57  ;;  %2194 = vmatmul.msk.f32.vlgmr.msrb.gmra.mxu1 %vm187_vm7, %v2245_v57 }
 0x39d   :  { %2206 = vmatpush.xpose.msk.msrb.mxu0 %vm187_vm7, %v870_v43  ;;  %823 = vmatpush.msra.mxu2 %v617_v60 }
 0x39e   :  { %852 = vmatpush.msrb.mxu3 %v697_v1  ;;  %2198 = vmatmul.msk.f32.vlgmr.msra.gmra.mxu2 %vm187_vm7, %v2245_v57 }
 0x39f   :  { %2202 = vmatmul.msk.f32.vlgmr.msrb.gmra.mxu3 %vm187_vm7, %v2245_v57 }
 0x3a4   :  { %2191 = vmatmul.msk.f32.gmra.mxu0 %vm187_vm7, %v2246_v44  ;;  %2195 = vmatmul.msk.f32.gmra.mxu1 %vm187_vm7, %v2246_v44 }
 0x3a6   :  { %2199 = vmatmul.msk.f32.gmra.mxu2 %vm187_vm7, %v2246_v44 }
 0x3a7   :  { %2203 = vmatmul.msk.f32.gmra.mxu3 %vm187_vm7, %v2246_v44 }
 0x3ac   :  { %2192 = vmatmul.msk.f32.gmra.mxu0 %vm187_vm7, %v2249_v15  ;;  %2196 = vmatmul.msk.f32.gmra.mxu1 %vm187_vm7, %v2249_v15 }
 0x3ae   :  { %2200 = vmatmul.msk.f32.gmra.mxu2 %vm187_vm7, %v2249_v15 }
 0x3af   :  { %2204 = vmatmul.msk.f32.gmra.mxu3 %vm187_vm7, %v2249_v15 }
 0x3b4   :  { %2193 = vmatmul.msk.f32.gmra.mxu0 %vm187_vm7, %v2250_v21  ;;  %2197 = vmatmul.msk.f32.gmra.mxu1 %vm187_vm7, %v2250_v21 }
 0x3b6   :  { %2201 = vmatmul.msk.f32.gmra.mxu2 %vm187_vm7, %v2250_v21 }
 0x3b7   :  { %2205 = vmatmul.msk.f32.gmra.mxu3 %vm187_vm7, %v2250_v21 }
 0x3bc   :  { %2207 = vmatmul.msk.f32.vlgmr.msrb.gmra.mxu0 %vm187_vm7, %v866_v22 }
 0x3c4   :  { %2208 = vmatmul.msk.f32.gmra.mxu0 %vm187_vm7, %v867_v16 }
 0x3cc   :  { %2209 = vmatmul.msk.f32.gmra.mxu0 %vm187_vm7, %v868_v23 }
 0x3d4   :  { %2210 = vmatmul.msk.f32.gmra.mxu0 %vm187_vm7, %v869_v24 }
 0x419   :  { %v2679_v26 = vpop.f32.mrf.mxu0 }
 0x421   :  { %v2681_v41 = vpop.f32.mrf.mxu0  ;;  %v825_v15 = vpop.f32.mrf.mxu2 }
 0x422   :  { %vm999_vm4 = vcmp.ge.f32.partialorder %v2681_v41, 0.0 }
 0x429   :  { %v2683_v11 = vpop.f32.mrf.mxu0 }
 0x431   :  { %v2685_v27 = vpop.f32.mrf.mxu0 }
 0x439   :  { %v903_v28 = vpop.f32.mrf.mxu0 }
 0x43a   :  { %v904_v29 = vadd.f32 1e-08, %v903_v28  ;;  %v828_v28 = vpop.f32.mrf.mxu2 }
 0x43b   :  { %v975_v33 = vpop.trf.xlu0  ;;  %vm1001_vm6 = vcmp.ge.f32.partialorder %v828_v28, 0.0 }
 0x43c   :  { %2285 = vrsqrt.f32 %v904_v29  ;;  %vm921_vm8 = vweird.f32 %v904_v29 }
 0x441   :  { %v906_v13 = vpop.f32.mrf.mxu0 }
 0x442   :  { %v907_v58 = vadd.f32 1e-08, %v906_v13  ;;  %v2286_v14 = vpop.eup %2285 }
 0x443   :  { %v916_v31 = vmul.f32 %v2286_v14, %v904_v29  ;;  %vm922_vm7 = vweird.f32 %v2286_v14  ;;  %v976_v49 = vpop.trf.xlu0 }
 0x444   :  { %2287 = vrsqrt.f32 %v907_v58  ;;  %vm923_vm9 = vmor %vm921_vm8, %vm922_vm7  ;;  %vm931_vm12 = vweird.f32 %v907_v58  ;;  %vm997_vm7 = vcmp.ge.f32.partialorder %v825_v15, 0.0  ;;  %vm1003_vm8 = vcmp.ge.f32.partialorder %v2683_v11, 0.0 }
 0x445   :  { %v917_v32 = vmul.f32 %v2286_v14, %v916_v31  ;;  %v1015_v31 = vmul.f32 0.2, %v2681_v41 }
 0x447   :  { %v918_v34 = vmul.f32 0.5, %v917_v32  ;;  %v1017_v32 = vmul.f32 0.2, %v828_v28 }
 0x449   :  { %v909_v35 = vpop.f32.mrf.mxu0  ;;  %v919_v40 = vsub.f32 1.5, %v918_v34  ;;  %v2715_v34 = vpop.f32.mrf.mxu1 }
 0x44a   :  { %v2288_v36 = vpop.eup %2287  ;;  %v910_v37 = vadd.f32 1e-08, %v909_v35  ;;  %v1031_v35 = vsel %vm999_vm4, %v2681_v41, %v1015_v31  ;;  %v1011_v41 = vmul.f32 0.2, %v2679_v26 }
 0x44b   :  { %v926_v10 = vmul.f32 %v2288_v36, %v907_v58  ;;  %v920_v46 = vmul.f32 %v2286_v14, %v919_v40  ;;  %vm932_vm10 = vweird.f32 %v2288_v36  ;;  %v977_v61 = vpop.trf.xlu0 }
 0x44c   :  { %2289 = vrsqrt.f32 %v910_v37  ;;  %vm933_vm13 = vmor %vm931_vm12, %vm932_vm10  ;;  %vm941_vm14 = vweird.f32 %v910_v37 }
 0x44d   :  { %v927_v42 = vmul.f32 %v2288_v36, %v926_v10  ;;  %v924_v20 = vsel %vm923_vm9, %v2286_v14, %v920_v46  ;;  %v2719_v10 = vmul.f32 1.4142135, %v1031_v35  ;;  %v831_v46 = vpop.f32.mrf.mxu2  ;;  %vm995_vm9 = vcmp.ge.f32.partialorder %v2679_v26, 0.0 }
 0x44e   :  { %v2687_v48 = vmul.f32 %v975_v33, %v924_v20  ;;  %v2722_v20 = vpop.f32.mrf.mxu3  ;;  %vm1005_vm10 = vcmp.ge.f32.partialorder %v831_v46, 0.0 }
 0x44f   :  { %v928_v39 = vmul.f32 0.5, %v927_v42 }
 0x450   :  { %v1475_v30 = vperm.slane %v2687_v48, 0  ;;  %v1510_v4 = vperm.slane %v2687_v48, 5  ;;  %v1524_v9 = vperm.slane %v2687_v48, 7  ;;  %v1496_v19 = vperm.slane %v2687_v48, 3 }
 0x451   :  { %v929_v47 = vsub.f32 1.5, %v928_v39  ;;  %v912_v57 = vpop.f32.mrf.mxu0  ;;  %v1482_v1 = vperm.slane %v2687_v48, 1  ;;  %v1517_v18 = vperm.slane %v2687_v48, 6  ;;  %v1489_v14 = vperm.slane %v2687_v48, 2 }
 0x452   :  { %v2290_v25 = vpop.eup %2289  ;;  %1480 = vperm.xlu2 %2275, %v1475_v30   ;;  %v913_v5 = vadd.f32 1e-08, %v912_v57  ;;  %v1019_v30 = vmul.f32 0.2, %v2683_v11 }
 0x453   :  { %v936_v51 = vmul.f32 %v2290_v25, %v910_v37  ;;  %v930_v53 = vmul.f32 %v2288_v36, %v929_v47  ;;  %vm942_vm15 = vweird.f32 %v2290_v25  ;;  %v978_v13 = vpop.trf.xlu0  ;;  %v1033_v37 = vsel %vm1001_vm6, %v828_v28, %v1017_v32 }
 0x454   :  { %vm943_vm0 = vmor %vm941_vm14, %vm942_vm15  ;;  %2291 = vrsqrt.f32 %v913_v5  ;;  %vm951_vm1 = vweird.f32 %v913_v5  ;;  %v1021_v47 = vmul.f32 0.2, %v831_v46  ;;  %vm996_vm14 = vcmp.ge.f32.partialorder %v2715_v34, 0.0 }
 0x455   :  { %v937_v54 = vmul.f32 %v2290_v25, %v936_v51  ;;  %v934_v52 = vsel %vm933_vm13, %v2288_v36, %v930_v53  ;;  %v1013_v36 = vmul.f32 0.2, %v825_v15  ;;  %v1035_v53 = vsel %vm1003_vm8, %v2683_v11, %v1019_v30 }
 0x456   :  { %v2690_v8 = vmul.f32 %v976_v49, %v934_v52  ;;  %v2726_v49 = vmul.f32 1.4142135, %v1033_v37  ;;  %v799_v52 = vpop.f32.mrf.mxu1  ;;  %vm998_vm15 = vcmp.ge.f32.partialorder %v2722_v20, 0.0 }
 0x457   :  { %v938_v55 = vmul.f32 0.5, %v937_v54  ;;  %v1029_v39 = vsel %vm997_vm7, %v825_v15, %v1013_v36  ;;  %vm1000_vm12 = vcmp.ge.f32.partialorder %v799_v52, 0.0  ;;  %vm2172_vm7 = vcmask 1043456  }
 0x458   :  { %v1552_v56 = vperm.slane %v2690_v8, 3  ;;  %v1580_v59 = vperm.slane %v2690_v8, 7  ;;  %v1573_v3 = vperm.slane %v2690_v8, 6  ;;  %v1538_v6 = vperm.slane %v2690_v8, 1 }
 0x459   :  { %v939_v50 = vsub.f32 1.5, %v938_v55  ;;  %v1566_v12 = vperm.slane %v2690_v8, 5  ;;  %v1559_v17 = vperm.slane %v2690_v8, 4  ;;  %v1545_v23 = vperm.slane %v2690_v8, 2 }
 0x45a   :  { %1557 = vperm.xlu1 %2274, %v1552_v56   ;;  %1585 = vperm.xlu2 %2275, %v1580_v59   ;;  %v2292_v43 = vpop.eup %2291  ;;  %v1045_v51 = vmul.f32 1.4142135, %v1029_v39  ;;  %v1121_v54 = vrot.slane %v2726_v49, 4  ;;  %v1027_v55 = vsel %vm995_vm9, %v2679_v26, %v1011_v41  ;;  %v1037_v56 = vsel %vm1005_vm10, %v831_v46, %v1021_v47  ;;  %v857_v26 = vpop.f32.mrf.mxu3 }
 0x45b   :  { %v940_v62 = vmul.f32 %v2290_v25, %v939_v50  ;;  %v946_v60 = vmul.f32 %v2292_v43, %v913_v5  ;;  %vm952_vm2 = vweird.f32 %v2292_v43  ;;  %v1043_v11 = vmul.f32 1.4142135, %v1027_v55 }
 0x45c   :  { %vm953_vm3 = vmor %vm951_vm1, %vm952_vm2  ;;  %vm1002_vm13 = vcmp.ge.f32.partialorder %v857_v26, 0.0  ;;  %v1069_v35 = vrot.slane %v1045_v51, 4  ;;  %v1012_v41 = vmul.f32 0.2, %v2715_v34 }
 0x45d   :  { %v944_v63 = vsel %vm943_vm0, %v2290_v25, %v940_v62  ;;  %v947_v44 = vmul.f32 %v2292_v43, %v946_v60  ;;  %v1111_v25 = vrot.slane %v2719_v10, 4  ;;  %v2739_v62 = vmul.f32 1.4142135, %v1035_v53 }
 0x45e   :  { %v2694_v0 = vmul.f32 %v977_v61, %v944_v63  ;;  %v2737_v61 = vperm.slane %v1045_v51, %v2535_v7  ;;  %vm1007_vm0 = vcmp.ge.f32.partialorder %v2685_v27, 0.0 }
 0x45f   :  { %v948_v21 = vmul.f32 0.5, %v947_v44  ;;  %v1112_v50 = vsel %vm578_vm5, 0.0, %v1111_v25  ;;  %v1163_v57 = vrot.slane %v2739_v62, 4  ;;  %v1070_v25 = vsel %vm578_vm5, 0.0, %v1069_v35 }
 0x460   :  { %v1608_v2 = vperm.slane %v2694_v0, 3  ;;  %v1636_v38 = vperm.slane %v2694_v0, 7  ;;  %v1622_v22 = vperm.slane %v2694_v0, 5  ;;  %v1601_v29 = vperm.slane %v2694_v0, 2 }
 0x461   :  { %v949_v16 = vsub.f32 1.5, %v948_v21  ;;  %v1629_v42 = vperm.slane %v2694_v0, 6  ;;  %v1594_v63 = vperm.slane %v2694_v0, 1  ;;  %v1587_v39 = vperm.slane %v2694_v0, 0 }
 0x462   :  { %1613 = vperm.xlu0 %2276, %v1608_v2   ;;  %1578 = vperm.xlu1 %2274, %v1573_v3   ;;  %v1016_v2 = vmul.f32 0.2, %v799_v52  ;;  %v1122_v3 = vsel %vm578_vm5, 0.0, %v1121_v54 }
 0x463   :  { %1641 = vperm.xlu2 %2275, %v1636_v38   ;;  %v950_v24 = vmul.f32 %v2292_v43, %v949_v16  ;;  %v2743_v38 = vmul.f32 1.4142135, %v1037_v56  ;;  %v2751_v5 = vperm.slane %v1122_v3, %v2535_v7  ;;  %v2811_v56 = vperm.slane %v1070_v25, %v2535_v7 }
 0x465   :  { %v954_v58 = vsel %vm953_vm3, %v2292_v43, %v950_v24 }
 0x466   :  { %v2713_v33 = vmul.f32 %v978_v13, %v954_v58 }
 0x468   :  { %v1664_v40 = vperm.slane %v2713_v33, 3  ;;  %v1685_v59 = vperm.slane %v2713_v33, 6  ;;  %v1650_v60 = vperm.slane %v2713_v33, 1 }
 0x46a   :  { %1515 = vperm.xlu1 %2274, %v1510_v4   ;;  %v2746_v4 = vperm.slane %v1112_v50, %v2535_v7  ;;  %v1014_v50 = vmul.f32 0.2, %v2722_v20 }
 0x46b   :  { %1529 = vperm.xlu2 %2275, %v1524_v9   ;;  %v1079_v9 = vrot.slane %v2737_v61, 4 }
 0x46c   :  { %v1145_v43 = vrot.slane %v2746_v4, 4 }
 0x472   :  { %1543 = vperm.xlu1 %2274, %v1538_v6   ;;  %v1032_v6 = vsel %vm1000_vm12, %v799_v52, %v1016_v2 }
 0x473   :  { %1571 = vperm.xlu2 %2275, %v1566_v12   ;;  %v1018_v12 = vmul.f32 0.2, %v857_v26  ;;  %v2760_v44 = vmul.f32 1.4142135, %v1032_v6 }
 0x475   :  { %v1034_v21 = vsel %vm1002_vm13, %v857_v26, %v1018_v12  ;;  %v1643_v26 = vperm.slane %v2713_v33, 0 }
 0x476   :  { %v2775_v13 = vmul.f32 1.4142135, %v1034_v21 }
 0x47a   :  { %1564 = vperm.xlu1 %2274, %v1559_v17   ;;  %v2754_v17 = vperm.slane %v1043_v11, %v2535_v7 }
 0x47b   :  { %1501 = vperm.xlu2 %2275, %v1496_v19   ;;  %v1173_v19 = vrot.slane %v2743_v38, 4 }
 0x47c   :  { %v1080_v15 = vsel %vm578_vm5, %v1079_v9, %v2754_v17 }
 0x47d   :  { %v1174_v16 = vsel %vm578_vm5, 0.0, %v1173_v19  ;;  %v2772_v28 = vperm.slane %v1080_v15, %v2558_v45  ;;  %v2830_v19 = vperm.slane %v2719_v10, %v2535_v7  ;;  %v1143_v10 = vrot.slane %v2751_v5, 4 }
 0x47e   :  { %v2783_v31 = vperm.slane %v1174_v16, %v2535_v7 }
 0x482   :  { %1487 = vperm.xlu1 %2274, %v1482_v1   ;;  %v1164_v1 = vsel %vm578_vm5, 0.0, %v1163_v57  ;;  %v1692_v57 = vperm.slane %v2713_v33, 7 }
 0x483   :  { %1522 = vperm.xlu2 %2275, %v1517_v18   ;;  %v1615_v18 = vperm.slane %v2694_v0, 4  ;;  %v2769_v24 = vperm.slane %v1164_v1, %v2535_v7 }
 0x485   :  { %v1197_v37 = vrot.slane %v2769_v24, 4 }
 0x487   :  { %v1198_v47 = vsel %vm578_vm5, %v2783_v31, %v1197_v37 }
 0x488   :  { %v2808_v55 = vperm.slane %v1198_v47, %v2558_v45 }
 0x48a   :  { %1627 = vperm.xlu1 %2274, %v1622_v22   ;;  %v1146_v22 = vsel %vm578_vm5, %v2751_v5, %v1145_v43  ;;  %v1213_v6 = vrot.slane %v2808_v55, 4 }
 0x48b   :  { %1550 = vperm.xlu2 %2275, %v1545_v23   ;;  %v1059_v23 = vrot.slane %v1043_v11, 4 }
 0x48d   :  { %v1060_v36 = vsel %vm578_vm5, 0.0, %v1059_v23  ;;  %v1133_v23 = vrot.slane %v2830_v19, 4 }
 0x48e   :  { %v2802_v51 = vperm.slane %v1060_v36, %v2535_v7  ;;  %v1503_v36 = vperm.slane %v2687_v48, 4 }
 0x490   :  { %v1093_v2 = vrot.slane %v2802_v51, 4 }
 0x492   :  { %1606 = vperm.xlu1 %2274, %v1601_v29   ;;  %v1319_v29 = vrot.slane %v2760_v44, 4  ;;  %v1094_v12 = vsel %vm578_vm5, %v2811_v56, %v1093_v2 }
 0x493   :  { %1494 = vperm.xlu2 %2275, %v1489_v14   ;;  %v2780_v14 = vperm.slane %v1146_v22, %v2558_v45  ;;  %v2844_v22 = vperm.slane %v1094_v12, %v2558_v45 }
 0x494   :  { %v1320_v46 = vsel %vm578_vm5, 0.0, %v1319_v29 }
 0x495   :  { %v1161_v30 = vrot.slane %v2780_v14, 4  ;;  %v1328_v53 = vperm.slane %v1320_v46, %v2535_v7  ;;  %v1109_v5 = vrot.slane %v2844_v22, 4 }
 0x497   :  { %v1162_v54 = vsel %vm578_vm5, 0.0, %v1161_v30  ;;  %v1353_v11 = vrot.slane %v1328_v53, 4  ;;  %v1110_v25 = vsel %vm578_vm5, 0.0, %v1109_v5 }
 0x49a   :  { %1669 = vperm.xlu1 %2274, %v1664_v40   ;;  %v1671_v40 = vperm.slane %v2713_v33, 4 }
 0x49b   :  { %1634 = vperm.xlu2 %2275, %v1629_v42   ;;  %v1329_v42 = vrot.slane %v2775_v13, 4 }
 0x49d   :  { %v1330_v0 = vsel %vm578_vm5, 0.0, %v1329_v42 }
 0x49e   :  { %v1338_v3 = vperm.slane %v1330_v0, %v2535_v7 }
 0x4a0   :  { %v1354_v1 = vsel %vm578_vm5, %v1338_v3, %v1353_v11  ;;  %v1081_v11 = vrot.slane %v2754_v17, 4  ;;  %v1091_v17 = vrot.slane %v2811_v56, 4 }
 0x4a1   :  { %v2854_v35 = vperm.slane %v1354_v1, %v2558_v45 }
 0x4a2   :  { %1690 = vperm.xlu1 %2274, %v1685_v59   ;;  %v1028_v59 = vsel %vm996_vm14, %v2715_v34, %v1012_v41  ;;  %v1030_v34 = vsel %vm998_vm15, %v2722_v20, %v1014_v50  ;;  %v1214_v20 = vsel %vm578_vm5, 0.0, %v1213_v6  ;;  %v1082_v12 = vsel %vm578_vm5, %v2737_v61, %v1081_v11 }
 0x4a3   :  { %1599 = vperm.xlu2 %2275, %v1594_v63   ;;  %v2821_v9 = vmul.f32 1.4142135, %v1028_v59  ;;  %v2838_v15 = vmul.f32 1.4142135, %v1030_v34  ;;  %v1369_v41 = vrot.slane %v2854_v35, 4 }
 0x4a5   :  { %v1267_v43 = vrot.slane %v2821_v9, 4  ;;  %v1370_v50 = vsel %vm578_vm5, 0.0, %v1369_v41 }
 0x4a7   :  { %v1268_v29 = vsel %vm578_vm5, 0.0, %v1267_v43 }
 0x4a8   :  { %v1276_v42 = vperm.slane %v1268_v29, %v2535_v7  ;;  %v2901_v29 = vperm.slane %v1082_v12, %v2558_v45 }
 0x4aa   :  { %1655 = vperm.xlu1 %2274, %v1650_v60   ;;  %v1351_v60 = vrot.slane %v1338_v3, 4  ;;  %v1105_v41 = vrot.slane %v2901_v29, 4 }
 0x4ab   :  { %1620 = vperm.xlu2 %2275, %v1615_v18   ;;  %v2836_v18 = vperm.slane %v2726_v49, %v2535_v7  ;;  %v1277_v49 = vrot.slane %v2838_v15, 4 }
 0x4ac   :  { %v2777_v58 = vpop.permute.xlu2 %1480  ;;  %v1352_v37 = vsel %vm578_vm5, %v1351_v60, %v1328_v53  ;;  %v1324_v60 = vperm.slane %v2760_v44, %v2535_v7 }
 0x4ad   :  { %v2787_v32 = vmul.f32 %v2777_v58, %v2772_v28  ;;  %v1134_v46 = vsel %vm578_vm5, %v2836_v18, %v1133_v23  ;;  %v1278_v30 = vsel %vm578_vm5, 0.0, %v1277_v49  ;;  %v2868_v48 = vperm.slane %v1352_v37, %v2558_v45 }
 0x4ae   :  { %v2871_v47 = vperm.slane %v1134_v46, %v2558_v45  ;;  %v1341_v56 = vrot.slane %v1324_v60, 4 }
 0x4af   :  { %v1367_v2 = vrot.slane %v2868_v48, 4 }
 0x4b0   :  { %v1157_v3 = vrot.slane %v2871_v47, 4 }
 0x4b1   :  { %v1368_v1 = vsel %vm578_vm5, 0.0, %v1367_v2 }
 0x4b2   :  { %1676 = vperm.xlu1 %2274, %v1671_v40   ;;  %v1678_v40 = vperm.slane %v2713_v33, 5 }
 0x4b3   :  { %1592 = vperm.xlu2 %2275, %v1587_v39   ;;  %v1144_v39 = vsel %vm578_vm5, %v1143_v10, %v2746_v4  ;;  %v1286_v4 = vperm.slane %v1278_v30, %v2535_v7  ;;  %v1531_v30 = vperm.slane %v2690_v8, 0  ;;  %v1131_v8 = vrot.slane %v2836_v18, 4 }
 0x4b4   :  { %v1586_v52 = vpop.permute.xlu2 %1585  ;;  %v2875_v0 = vperm.slane %v1144_v39, %v2558_v45 }
 0x4b5   :  { %v2815_v63 = vmul.f32 %v1586_v52, %v1162_v54  ;;  %v1301_v54 = vrot.slane %v1276_v42, 4  ;;  %v1730_v6 = vmul.f32 %v1586_v52, %v1370_v50  ;;  %v1299_v43 = vrot.slane %v1286_v4, 4 }
 0x4b6   :  { %v1132_v12 = vsel %vm578_vm5, %v1131_v8, %v2830_v19  ;;  %v834_v8 = vpop.f32.mrf.mxu2 }
 0x4b7   :  { %v1302_v34 = vsel %vm578_vm5, %v1286_v4, %v1301_v54  ;;  %v1821_v44 = vrot.slane %v2815_v63, 4  ;;  %v1981_v49 = vrot.slane %v1730_v6, 4  ;;  %v1300_v5 = vsel %vm578_vm5, %v1299_v43, %v1276_v42 }
 0x4b8   :  { %v2895_v10 = vperm.slane %v1302_v34, %v2558_v45  ;;  %v1092_v63 = vsel %vm578_vm5, %v1091_v17, %v2802_v51  ;;  %v2919_v54 = vperm.slane %v1300_v5, %v2558_v45  ;;  %v1106_v51 = vsel %vm578_vm5, 0.0, %v1105_v41 }
 0x4b9   :  { %v2925_v50 = vperm.slane %v1092_v63, %v2558_v45  ;;  %vm1009_vm2 = vcmp.ge.f32.partialorder %v834_v8, 0.0 }
 0x4ba   :  { %1648 = vperm.xlu1 %2274, %v1643_v26   ;;  %v1657_v26 = vperm.slane %v2713_v33, 2  ;;  %v1315_v6 = vrot.slane %v2919_v54, 4 }
 0x4bb   :  { %1697 = vperm.xlu2 %2275, %v1692_v57   ;;  %v1159_v57 = vrot.slane %v2875_v0, 4  ;;  %v1107_v34 = vrot.slane %v2925_v50, 4 }
 0x4bd   :  { %v2841_v21 = vpop.permute.xlu2 %1641  ;;  %v1160_v23 = vsel %vm578_vm5, 0.0, %v1159_v57 }
 0x4be   :  { %v2848_v16 = vmul.f32 %v2841_v21, %v1214_v20  ;;  %v1158_v20 = vsel %vm578_vm5, 0.0, %v1157_v3 }
 0x4c2   :  { %1508 = vperm.xlu1 %2274, %v1503_v36  }
 0x4c3   :  { %1683 = vperm.xlu2 %2275, %v1678_v40   ;;  %v1334_v40 = vperm.slane %v2775_v13, %v2535_v7 }
 0x4c5   :  { %v1530_v53 = vpop.permute.xlu2 %1529  ;;  %v1339_v13 = vrot.slane %v1334_v40, 4  ;;  %v1342_v42 = vsel %vm578_vm5, %v1334_v40, %v1341_v56 }
 0x4c6   :  { %v2878_v59 = vmul.f32 %v1530_v53, %v1110_v25  ;;  %v1317_v25 = vrot.slane %v2895_v10, 4 }
 0x4c7   :  { %v1340_v18 = vsel %vm578_vm5, %v1339_v13, %v1324_v60  ;;  %v1108_v60 = vsel %vm578_vm5, 0.0, %v1107_v34  ;;  %v802_v13 = vpop.f32.mrf.mxu1 }
 0x4c8   :  { %v1318_v3 = vsel %vm578_vm5, 0.0, %v1317_v25  ;;  %v2950_v17 = vperm.slane %v1340_v18, %v2558_v45  ;;  %v1781_v19 = vrot.slane %v2878_v59, 4  ;;  %v1020_v18 = vmul.f32 0.2, %v802_v13 }
 0x4c9   :  { %vm1004_vm1 = vcmp.ge.f32.partialorder %v802_v13, 0.0 }
 0x4ca   :  { %v1363_v40 = vrot.slane %v2950_v17, 4 }
 0x4cb   :  { %1662 = vperm.xlu2 %2275, %v1657_v26   ;;  %v2937_v26 = vperm.slane %v1342_v42, %v2558_v45 }
 0x4cc   :  { %v1558_v33 = vpop.permute.xlu1 %1557 }
 0x4cd   :  { %v2897_v52 = vmul.f32 %v1558_v33, %v1158_v20  ;;  %v1572_v61 = vpop.permute.xlu2 %1571  ;;  %v1365_v43 = vrot.slane %v2937_v26, 4  ;;  %v1023_v20 = vmul.f32 0.2, %v2685_v27 }
 0x4ce   :  { %v1725_v36 = vmul.f32 %v1572_v61, %v1160_v23  ;;  %v1726_v37 = vmul.f32 %v1572_v61, %v1368_v1  ;;  %v1316_v1 = vsel %vm578_vm5, 0.0, %v1315_v6  ;;  %v1272_v23 = vperm.slane %v2821_v9, %v2535_v7 }
 0x4cf   :  { %v1366_v56 = vsel %vm578_vm5, 0.0, %v1365_v43  ;;  %v1039_v25 = vsel %vm1007_vm0, %v2685_v27, %v1023_v20  ;;  %v1809_v27 = vrot.slane %v2897_v52, 4  ;;  %v1025_v20 = vmul.f32 0.2, %v834_v8 }
 0x4d0   :  { %v2908_v46 = vsel %vm578_vm5, %v1821_v44, %v1725_v36  ;;  %v2911_v39 = vsel %vm578_vm5, %v1981_v49, %v1726_v37  ;;  %v1289_v5 = vrot.slane %v1272_v23, 4  ;;  %v1722_v42 = vmul.f32 %v1558_v33, %v1366_v56  ;;  %v860_v56 = vpop.f32.mrf.mxu3 }
 0x4d1   :  { %v2985_v6 = vmul.f32 1.4142135, %v1039_v25  ;;  %v1826_v25 = vperm.slane %v2908_v46, %v2535_v7  ;;  %vm1006_vm3 = vcmp.ge.f32.partialorder %v860_v56, 0.0 }
 0x4d3   :  { %1536 = vperm.xlu2 %2275, %v1531_v30   ;;  %v1282_v30 = vperm.slane %v2838_v15, %v2535_v7  ;;  %v2983_v15 = vperm.slane %v2739_v62, %v2535_v7 }
 0x4d4   :  { %v2922_v4 = vpop.permute.xlu1 %1578 }
 0x4d5   :  { %v2930_v2 = vmul.f32 %v2922_v4, %v2780_v14  ;;  %v2933_v11 = vpop.permute.xlu2 %1501  ;;  %v1714_v14 = vmul.f32 %v1530_v53, %v1318_v3  ;;  %v2957_v53 = vperm.slane %v1132_v12, %v2558_v45  ;;  %v1290_v3 = vsel %vm578_vm5, %v1282_v30, %v1289_v5 }
 0x4d6   :  { %v2940_v57 = vmul.f32 %v2933_v11, %v1106_v51  ;;  %v1287_v51 = vrot.slane %v1282_v30, 4  ;;  %v1969_v12 = vrot.slane %v1722_v42, 4 }
 0x4d7   :  { %v1941_v44 = vrot.slane %v1714_v14, 4  ;;  %v1155_v63 = vrot.slane %v2957_v53, 4 }
 0x4d9   :  { %v1156_v34 = vsel %vm578_vm5, 0.0, %v1155_v63  ;;  %v1041_v63 = vsel %vm1009_vm2, %v834_v8, %v1025_v20 }
 0x4da   :  { %v1057_v20 = vmul.f32 1.4142135, %v1041_v63 }
 0x4dc   :  { %v1516_v61 = vpop.permute.xlu1 %1515 }
 0x4dd   :  { %v1709_v49 = vmul.f32 %v1516_v61, %v1108_v60  ;;  %v1710_v36 = vmul.f32 %v1516_v61, %v1316_v1  ;;  %v2960_v37 = vpop.permute.xlu2 %1522  ;;  %v1298_v60 = vperm.slane %v1290_v3, %v2558_v45  ;;  %v1195_v61 = vrot.slane %v2783_v31, 4 }
 0x4de   :  { %v2966_v9 = vmul.f32 %v2960_v37, %v2844_v22  ;;  %v1364_v22 = vsel %vm578_vm5, 0.0, %v1363_v40  ;;  %v1728_v40 = vmul.f32 %v2922_v4, %v2854_v35  ;;  %v1215_v31 = vrot.slane %v2985_v6, 4 }
 0x4df   :  { %v2972_v59 = vsel %vm578_vm5, %v1781_v19, %v1709_v49  ;;  %v2975_v41 = vsel %vm578_vm5, %v1941_v44, %v1710_v36  ;;  %v1288_v19 = vsel %vm578_vm5, %v1287_v51, %v1272_v23  ;;  %v1185_v49 = vrot.slane %v2983_v15, 4 }
 0x4e0   :  { %v1036_v36 = vsel %vm1004_vm1, %v802_v13, %v1020_v18  ;;  %v3011_v23 = vperm.slane %v2743_v38, %v2535_v7  ;;  %v1294_v5 = vperm.slane %v1288_v19, %v2558_v45  ;;  %v1313_v30 = vrot.slane %v1298_v60, 4 }
 0x4e1   :  { %v1986_v13 = vperm.slane %v2911_v39, %v2535_v7  ;;  %v1196_v35 = vsel %vm578_vm5, %v1195_v61, %v2769_v24  ;;  %v1022_v4 = vmul.f32 0.2, %v860_v56  ;;  %v1975_v51 = vrot.slane %v1728_v40, 4 }
 0x4e2   :  { %v1311_v38 = vrot.slane %v1294_v5, 4  ;;  %v1700_v18 = vmul.f32 %v2777_v58, %v1294_v5  ;;  %v1314_v39 = vsel %vm578_vm5, 0.0, %v1313_v30  ;;  %v1183_v30 = vrot.slane %v3011_v23, 4 }
 0x4e3   :  { %v1038_v58 = vsel %vm1006_vm3, %v860_v56, %v1022_v4  ;;  %v1706_v61 = vmul.f32 %v2933_v11, %v1314_v39  ;;  %v3047_v11 = vperm.slane %v1196_v35, %v2558_v45  ;;  %v1220_v35 = vperm.slane %v2985_v6, %v2535_v7 }
 0x4e4   :  { %v1544_v14 = vpop.permute.xlu1 %1543  ;;  %v1184_v6 = vsel %vm578_vm5, %v1183_v30, %v2983_v15  ;;  %v1861_v30 = vrot.slane %v2848_v16, 4 }
 0x4e5   :  { %v1717_v33 = vmul.f32 %v1544_v14, %v1156_v34  ;;  %v1718_v43 = vmul.f32 %v1544_v14, %v1364_v22  ;;  %v2989_v1 = vpop.permute.xlu2 %1550  ;;  %v1815_v22 = vrot.slane %v2930_v2, 4  ;;  %v1833_v14 = vrot.slane %v1826_v25, 4 }
 0x4e6   :  { %v2994_v62 = vmul.f32 %v2989_v1, %v2871_v47  ;;  %v1103_v47 = vrot.slane %v2772_v28, 4  ;;  %v3020_v28 = vmul.f32 1.4142135, %v1036_v36  ;;  %v805_v36 = vpop.f32.mrf.mxu1  ;;  %v1054_v25 = vmul.f32 1.4142135, %v1038_v58 }
 0x4e7   :  { %v2999_v44 = vsel %vm578_vm5, %v1809_v27, %v1717_v33  ;;  %v3002_v52 = vsel %vm578_vm5, %v1969_v12, %v1718_v43  ;;  %v1993_v27 = vrot.slane %v1986_v13, 4  ;;  %v1769_v13 = vrot.slane %v2940_v57, 4 }
 0x4e8   :  { %v1104_v56 = vsel %vm578_vm5, 0.0, %v1103_v47  ;;  %v1371_v63 = vrot.slane %v3020_v28, 4  ;;  %v1216_v47 = vsel %vm578_vm5, 0.0, %v1215_v31  ;;  %vm1008_vm4 = vcmp.ge.f32.partialorder %v805_v36, 0.0 }
 0x4e9   :  { %v3075_v58 = vperm.slane %v1184_v6, %v2558_v45  ;;  %v3079_v15 = vperm.slane %v3020_v28, %v2535_v7 }
 0x4ec   :  { %v1565_v42 = vpop.permute.xlu1 %1564 }
 0x4ed   :  { %v1723_v8 = vmul.f32 %v1565_v42, %v2875_v0  ;;  %v1724_v3 = vmul.f32 %v1565_v42, %v2868_v48  ;;  %v1495_v46 = vpop.permute.xlu2 %1494  ;;  %v1929_v42 = vrot.slane %v1706_v61, 4 }
 0x4ee   :  { %v1703_v24 = vmul.f32 %v1495_v46, %v2901_v29  ;;  %v1704_v34 = vmul.f32 %v1495_v46, %v1298_v60  ;;  %v1312_v29 = vsel %vm578_vm5, 0.0, %v1311_v38  ;;  %v863_v46 = vpop.f32.mrf.mxu3 }
 0x4ef   :  { %v1816_v12 = vsel %vm578_vm5, %v1815_v22, %v1723_v8  ;;  %v1976_v33 = vsel %vm578_vm5, %v1975_v51, %v1724_v3  ;;  %v1024_v8 = vmul.f32 0.2, %v805_v36  ;;  %v1225_v3 = vrot.slane %v1057_v20, 4 }
 0x4f0   :  { %v1820_v2 = vperm.slane %v1816_v12, %v2535_v7  ;;  %v1980_v0 = vperm.slane %v1976_v33, %v2535_v7  ;;  %v1763_v43 = vrot.slane %v1703_v24, 4  ;;  %v1923_v48 = vrot.slane %v1704_v34, 4 }
 0x4f1   :  { %v1372_v34 = vsel %vm578_vm5, 0.0, %v1371_v63  ;;  %v1026_v12 = vmul.f32 0.2, %v863_v46  ;;  %vm1010_vm6 = vcmp.ge.f32.partialorder %v863_v46, 0.0 }
 0x4f2   :  { %v1764_v60 = vsel %vm578_vm5, %v1763_v43, %v2787_v32  ;;  %v1924_v19 = vsel %vm578_vm5, %v1923_v48, %v1700_v18  ;;  %v3039_v40 = vsel %vm578_vm5, %v1833_v14, %v1820_v2  ;;  %v3042_v5 = vsel %vm578_vm5, %v1993_v27, %v1980_v0 }
 0x4f3   :  { %v1186_v32 = vsel %vm578_vm5, %v3011_v23, %v1185_v49  ;;  %v1230_v18 = vperm.slane %v1057_v20, %v2535_v7  ;;  %v1211_v23 = vrot.slane %v3047_v11, 4  ;;  %v1381_v14 = vrot.slane %v1054_v25, 4 }
 0x4f4   :  { %v1488_v4 = vpop.permute.xlu1 %1487  ;;  %v3063_v39 = vperm.slane %v1186_v32, %v2558_v45  ;;  %v1040_v27 = vsel %vm1008_vm4, %v805_v36, %v1024_v8  ;;  %v1768_v33 = vperm.slane %v1764_v60, %v2535_v7  ;;  %v1928_v2 = vperm.slane %v1924_v19, %v2535_v7 }
 0x4f5   :  { %v1701_v38 = vmul.f32 %v1488_v4, %v1104_v56  ;;  %v1702_v22 = vmul.f32 %v1488_v4, %v1312_v29  ;;  %v3053_v51 = vpop.permute.xlu2 %1634  ;;  %v1226_v48 = vsel %vm578_vm5, 0.0, %v1225_v3  ;;  %v1212_v20 = vsel %vm578_vm5, 0.0, %v1211_v23 }
 0x4f6   :  { %v1380_v61 = vperm.slane %v1372_v34, %v2535_v7  ;;  %v1382_v36 = vsel %vm578_vm5, 0.0, %v1381_v14  ;;  %v1056_v28 = vmul.f32 1.4142135, %v1040_v27  ;;  %v1224_v32 = vperm.slane %v1216_v47, %v2535_v7 }
 0x4f7   :  { %v1770_v49 = vsel %vm578_vm5, %v1769_v13, %v1701_v38  ;;  %v1930_v57 = vsel %vm578_vm5, %v1929_v42, %v1702_v22  ;;  %v1237_v13 = vrot.slane %v1220_v35, 4  ;;  %v1234_v4 = vperm.slane %v1226_v48, %v2535_v7 }
 0x4f8   :  { %v1774_v24 = vperm.slane %v1770_v49, %v2535_v7  ;;  %v1934_v31 = vperm.slane %v1930_v57, %v2535_v7  ;;  %v1042_v42 = vsel %vm1010_vm6, %v863_v46, %v1026_v12  ;;  %v1235_v38 = vrot.slane %v1230_v18, 4 }
 0x4f9   :  { %v1209_v22 = vrot.slane %v3063_v39, 4  ;;  %v1423_v3 = vrot.slane %v1056_v28, 4  ;;  %v1393_v49 = vrot.slane %v3079_v15, 4  ;;  %v1405_v16 = vrot.slane %v1380_v61, 4 }
 0x4fa   :  { %v1787_v0 = vrot.slane %v1774_v24, 4  ;;  %v1947_v43 = vrot.slane %v1934_v31, 4  ;;  %v3101_v57 = vperm.slane %v1054_v25, %v2535_v7  ;;  %v1390_v23 = vperm.slane %v1382_v36, %v2535_v7  ;;  %v3104_v24 = vpop.permute.xlu0 %1613 }
 0x4fb   :  { %v1207_v47 = vrot.slane %v3075_v58, 4  ;;  %v1058_v31 = vmul.f32 1.4142135, %v1042_v42  ;;  %v1247_v46 = vrot.slane %v1234_v4, 4  ;;  %v1743_v6 = vmul.f32 %v3053_v51, %v2808_v55 }
 0x4fc   :  { %v3082_v29 = vpop.permute.xlu1 %1627  ;;  %v3085_v60 = vsel %vm578_vm5, %v1787_v0, %v1768_v33  ;;  %v3088_v19 = vsel %vm578_vm5, %v1947_v43, %v1928_v2  ;;  %v1238_v34 = vsel %vm578_vm5, %v1230_v18, %v1237_v13  ;;  %v1210_v14 = vsel %vm578_vm5, 0.0, %v1209_v22 }
 0x4fd   :  { %v1741_v56 = vmul.f32 %v3082_v29, %v1212_v20  ;;  %v3093_v63 = vpop.permute.xlu2 %1599  ;;  %v1424_v27 = vsel %vm578_vm5, 0.0, %v1423_v3  ;;  %v1433_v12 = vrot.slane %v1058_v31, 4  ;;  %v1249_v25 = vrot.slane %v1224_v32, 4 }
 0x4fe   :  { %v1406_v33 = vsel %vm578_vm5, %v1390_v23, %v1405_v16  ;;  %v1394_v2 = vsel %vm578_vm5, %v3101_v57, %v1393_v49  ;;  %v1737_v0 = vmul.f32 %v3104_v24, %v1210_v14  ;;  %v1236_v48 = vsel %vm578_vm5, %v1235_v38, %v1220_v35 }
 0x4ff   :  { %v1862_v8 = vsel %vm578_vm5, %v1861_v30, %v1741_v56  ;;  %v1403_v55 = vrot.slane %v1390_v23, 4  ;;  %v1208_v20 = vsel %vm578_vm5, 0.0, %v1207_v47  ;;  %v1250_v30 = vsel %vm578_vm5, %v1234_v4, %v1249_v25 }
 0x500   :  { %v1866_v18 = vperm.slane %v1862_v8, %v2535_v7  ;;  %v1855_v56 = vrot.slane %v1743_v6, 4  ;;  %v1733_v13 = vmul.f32 %v3093_v63, %v1208_v20  ;;  %v1432_v42 = vperm.slane %v1424_v27, %v2535_v7 }
 0x501   :  { %v3129_v3 = vperm.slane %v1406_v33, %v2558_v45  ;;  %v3132_v35 = vperm.slane %v1394_v2, %v2558_v45  ;;  %v1434_v38 = vsel %vm578_vm5, 0.0, %v1433_v12  ;;  %v3136_v8 = vperm.slane %v1238_v34, %v2558_v45 }
 0x502   :  { %v1849_v4 = vrot.slane %v1737_v0, 4  ;;  %v3140_v16 = vperm.slane %v1250_v30, %v2558_v45  ;;  %v1248_v23 = vsel %vm578_vm5, %v1247_v46, %v1224_v32  ;;  %v1873_v47 = vrot.slane %v1866_v18, 4 }
 0x503   :  { %v3146_v14 = vperm.slane %v1236_v48, %v2558_v45  ;;  %v1442_v34 = vperm.slane %v1434_v38, %v2535_v7  ;;  %v1457_v25 = vrot.slane %v1432_v42, 4  ;;  %v1421_v33 = vrot.slane %v3129_v3, 4 }
 0x504   :  { %v3116_v43 = vpop.permute.xlu1 %1606  ;;  %v1850_v27 = vsel %vm578_vm5, %v1849_v4, %v1733_v13  ;;  %v1417_v32 = vrot.slane %v3132_v35, 4  ;;  %v1261_v48 = vrot.slane %v3136_v8, 4  ;;  %v1391_v18 = vrot.slane %v3101_v57, 4 }
 0x505   :  { %v3121_v36 = vpop.permute.xlu2 %1620  ;;  %v1735_v12 = vmul.f32 %v3116_v43, %v3063_v39  ;;  %v1455_v0 = vrot.slane %v1442_v34, 4  ;;  %v1854_v39 = vperm.slane %v1850_v27, %v2535_v7  ;;  %v1265_v30 = vrot.slane %v3140_v16, 4 }
 0x506   :  { %v1739_v22 = vmul.f32 %v3121_v36, %v3047_v11  ;;  %v1404_v11 = vsel %vm578_vm5, %v1403_v55, %v1380_v61  ;;  %v1428_v61 = vperm.slane %v1056_v28, %v2535_v7  ;;  %v3168_v28 = vperm.slane %v1248_v23, %v2558_v45 }
 0x507   :  { %v3157_v2 = vperm.slane %v1404_v11, %v2558_v45  ;;  %v1259_v38 = vrot.slane %v3146_v14, 4  ;;  %v1422_v4 = vsel %vm578_vm5, 0.0, %v1421_v33  ;;  %v1418_v57 = vsel %vm578_vm5, 0.0, %v1417_v32 }
 0x508   :  { %v1856_v49 = vsel %vm578_vm5, %v1855_v56, %v1739_v22  ;;  %v1843_v56 = vrot.slane %v1735_v12, 4  ;;  %v1458_v22 = vsel %vm578_vm5, %v1442_v34, %v1457_v25  ;;  %v1438_v11 = vperm.slane %v1058_v31, %v2535_v7 }
 0x509   :  { %v1860_v6 = vperm.slane %v1856_v49, %v2535_v7  ;;  %v1445_v49 = vrot.slane %v1428_v61, 4  ;;  %v1867_v34 = vrot.slane %v1854_v39, 4  ;;  %v1466_v25 = vperm.slane %v1458_v22, %v2558_v45 }
 0x50a   :  { %v1443_v33 = vrot.slane %v1438_v11, 4  ;;  %v3186_v32 = vsel %vm578_vm5, 0.0, %v1261_v48  ;;  %v1263_v31 = vrot.slane %v3168_v28, 4 }
 0x50b   :  { %v1874_v46 = vsel %vm578_vm5, %v1873_v47, %v1860_v6  ;;  %v1419_v47 = vrot.slane %v3157_v2, 4  ;;  %v1456_v6 = vsel %vm578_vm5, %v1455_v0, %v1432_v42  ;;  %v1446_v42 = vsel %vm578_vm5, %v1438_v11, %v1445_v49 }
 0x50c   :  { %v3160_v55 = vpop.permute.xlu1 %1669  ;;  %v1878_v27 = vperm.slane %v1874_v46, %v2558_v45  ;;  %v3192_v46 = vperm.slane %v1456_v6, %v2558_v45  ;;  %v3196_v0 = vmul.f32 %v3104_v24, %v1418_v57  ;;  %v1260_v11 = vsel %vm578_vm5, 0.0, %v1259_v38 }
 0x50d   :  { %v3164_v20 = vpop.permute.xlu2 %1592  ;;  %v1420_v22 = vsel %vm578_vm5, 0.0, %v1419_v47  ;;  %v3208_v24 = vperm.slane %v1446_v42, %v2558_v45  ;;  %v1444_v57 = vsel %vm578_vm5, %v1443_v33, %v1428_v61  ;;  %v1786_v47 = vperm.slane %v2972_v59, %v2535_v7 }
 0x50e   :  { %v1731_v13 = vmul.f32 %v3164_v20, %v3075_v58  ;;  %v1392_v58 = vsel %vm578_vm5, %v1391_v18, %v3079_v15  ;;  %v1744_v61 = vmul.f32 %v3053_v51, %v3129_v3  ;;  %v3224_v42 = vperm.slane %v1444_v57, %v2558_v45 }
 0x50f   :  { %v1398_v18 = vperm.slane %v1392_v58, %v2558_v45  ;;  %v1471_v58 = vrot.slane %v3192_v46, 4  ;;  %v3238_v51 = vmul.f32 %v2989_v1, %v2937_v26  ;;  %v1740_v3 = vmul.f32 %v3121_v36, %v3157_v2 }
 0x510   :  { %v1844_v23 = vsel %vm578_vm5, %v1843_v56, %v1731_v13  ;;  %v1746_v56 = vmul.f32 %v2841_v21, %v1422_v4  ;;  %v1879_v13 = vrot.slane %v1878_v27, 4  ;;  %v1266_v21 = vsel %vm578_vm5, 0.0, %v1265_v30 }
 0x511   :  { %v1848_v12 = vperm.slane %v1844_v23, %v2535_v7  ;;  %v1473_v4 = vrot.slane %v1466_v25, 4  ;;  %v3205_v23 = vmul.f32 %v2960_v37, %v2895_v10  ;;  %v1264_v30 = vsel %vm578_vm5, 0.0, %v1263_v31 }
 0x512   :  { %v2009_v10 = vrot.slane %v3196_v0, 4  ;;  %v1742_v37 = vmul.f32 %v3082_v29, %v1420_v22  ;;  %v1469_v29 = vrot.slane %v3208_v24, 4  ;;  %v3234_v0 = vrot.slane %v1786_v47, 4 }
 0x513   :  { %v1868_v15 = vsel %vm578_vm5, %v1867_v34, %v1848_v12  ;;  %v2021_v34 = vrot.slane %v1746_v56, 4  ;;  %v1415_v12 = vrot.slane %v1398_v18, 4  ;;  %v1474_v33 = vsel %vm578_vm5, 0.0, %v1473_v4 }
 0x514   :  { %v1691_v39 = vpop.permute.xlu1 %1690  ;;  %v1872_v48 = vperm.slane %v1868_v15, %v2558_v45  ;;  %v1775_v56 = vrot.slane %v2966_v9, 4  ;;  %v1935_v15 = vrot.slane %v3205_v23, 4  ;;  %v1814_v47 = vperm.slane %v2999_v44, %v2535_v7 }
 0x515   :  { %v1698_v49 = vpop.permute.xlu2 %1697  ;;  %v1736_v26 = vmul.f32 %v3116_v43, %v3132_v35  ;;  %v1467_v1 = vrot.slane %v3224_v42, 4  ;;  %v1974_v36 = vperm.slane %v3002_v52, %v2535_v7  ;;  %v1470_v2 = vsel %vm578_vm5, 0.0, %v1469_v29 }
 0x516   :  { %v3212_v6 = vsel %vm578_vm5, %v1879_v13, %v1872_v48  ;;  %v1881_v38 = vrot.slane %v1872_v48, 4  ;;  %v2022_v48 = vsel %vm578_vm5, %v2021_v34, %v1742_v37  ;;  %v1416_v13 = vsel %vm578_vm5, 0.0, %v1415_v12 }
 0x517   :  { %v1761_v22 = vmul.f32 %v1698_v49, %v1266_v21  ;;  %v1762_v4 = vmul.f32 %v1698_v49, %v1474_v33  ;;  %v2026_v21 = vperm.slane %v2022_v48, %v2535_v7  ;;  %v1734_v49 = vmul.f32 %v3093_v63, %v1416_v13 }
 0x518   :  { %v3227_v59 = vsel %vm578_vm5, %v1878_v27, %v1881_v38  ;;  %v1472_v27 = vsel %vm578_vm5, 0.0, %v1471_v58  ;;  %v2015_v38 = vrot.slane %v1744_v61, 4  ;;  %v1732_v37 = vmul.f32 %v3164_v20, %v1398_v18 }
 0x519   :  { %v1759_v43 = vmul.f32 %v1691_v39, %v3140_v16  ;;  %v1760_v35 = vmul.f32 %v1691_v39, %v1466_v25  ;;  %v1901_v12 = vrot.slane %v1761_v22, 4  ;;  %v2061_v61 = vrot.slane %v1762_v4, 4 }
 0x51a   :  { %v2016_v44 = vsel %vm578_vm5, %v2015_v38, %v1740_v3  ;;  %v1803_v33 = vrot.slane %v2994_v62, 4  ;;  %v2003_v52 = vrot.slane %v1736_v26, 4  ;;  %v1468_v29 = vsel %vm578_vm5, 0.0, %v1467_v1 }
 0x51b   :  { %v1753_v63 = vmul.f32 %v3160_v55, %v3186_v32  ;;  %v2033_v25 = vrot.slane %v2026_v21, 4  ;;  %v2010_v18 = vsel %vm578_vm5, %v2009_v10, %v1734_v49  ;;  %v2020_v39 = vperm.slane %v2016_v44, %v2535_v7 }
 0x51c   :  { %v1656_v57 = vpop.permute.xlu1 %1655  ;;  %v2004_v3 = vsel %vm578_vm5, %v2003_v52, %v1732_v37  ;;  %v2055_v48 = vrot.slane %v1760_v35, 4  ;;  %v2014_v10 = vperm.slane %v2010_v18, %v2535_v7  ;;  %v1963_v52 = vrot.slane %v3238_v51, 4 }
 0x51d   :  { %v1684_v31 = vpop.permute.xlu2 %1683  ;;  %v1750_v13 = vmul.f32 %v1656_v57, %v1468_v29  ;;  %v1889_v1 = vrot.slane %v1753_v63, 4  ;;  %v2034_v21 = vsel %vm578_vm5, %v2033_v25, %v2020_v39 }
 0x51e   :  { %v1757_v58 = vmul.f32 %v1684_v31, %v1264_v30  ;;  %v1758_v34 = vmul.f32 %v1684_v31, %v1472_v27  ;;  %v3262_v30 = vperm.slane %v3039_v40, %v2558_v45  ;;  %v1754_v31 = vmul.f32 %v3160_v55, %v1470_v2 }
 0x51f   :  { %v1895_v27 = vrot.slane %v1759_v43, 4  ;;  %v1749_v40 = vmul.f32 %v1656_v57, %v1260_v11  ;;  %v2008_v11 = vperm.slane %v2004_v3, %v2535_v7  ;;  %v2027_v29 = vrot.slane %v2014_v10, 4 }
 0x520   :  { %v1902_v20 = vsel %vm578_vm5, %v1901_v12, %v1757_v58  ;;  %v2062_v16 = vsel %vm578_vm5, %v2061_v61, %v1758_v34  ;;  %v2049_v2 = vrot.slane %v1754_v31, 4  ;;  %v3279_v58 = vperm.slane %v3042_v5, %v2558_v45 }
 0x521   :  { %v1906_v32 = vperm.slane %v1902_v20, %v2535_v7  ;;  %v2066_v55 = vperm.slane %v2062_v16, %v2535_v7  ;;  %v1827_v12 = vrot.slane %v1814_v47, 4  ;;  %v1987_v61 = vrot.slane %v1974_v36, 4 }
 0x522   :  { %v2028_v18 = vsel %vm578_vm5, %v2027_v29, %v2008_v11  ;;  %v1999_v47 = vrot.slane %v3279_v58, 4 }
 0x523   :  { %v1913_v37 = vrot.slane %v1906_v32, 4  ;;  %v2073_v43 = vrot.slane %v2066_v55, 4 }
 0x524   :  { %v1677_v22 = vpop.permute.xlu1 %1676 }
 0x525   :  { %v1755_v4 = vmul.f32 %v1677_v22, %v3168_v28  ;;  %v1756_v38 = vmul.f32 %v1677_v22, %v3192_v46  ;;  %v1663_v26 = vpop.permute.xlu2 %1662  ;;  %v1890_v28 = vsel %vm578_vm5, %v1889_v1, %v1749_v40  ;;  %v2050_v46 = vsel %vm578_vm5, %v2049_v2, %v1750_v13 }
 0x526   :  { %v1751_v5 = vmul.f32 %v1663_v26, %v3136_v8  ;;  %v1752_v35 = vmul.f32 %v1663_v26, %v3208_v24  ;;  %v1894_v63 = vperm.slane %v1890_v28, %v2535_v7  ;;  %v2054_v31 = vperm.slane %v2050_v46, %v2535_v7 }
 0x527   :  { %v1896_v57 = vsel %vm578_vm5, %v1895_v27, %v1755_v4  ;;  %v2056_v34 = vsel %vm578_vm5, %v2055_v48, %v1756_v38  ;;  %v3298_v8 = vperm.slane %v2034_v21, %v2558_v45  ;;  %v1839_v24 = vrot.slane %v3262_v30, 4 }
 0x528   :  { %v1900_v49 = vperm.slane %v1896_v57, %v2535_v7  ;;  %v2060_v44 = vperm.slane %v2056_v34, %v2535_v7  ;;  %v1883_v51 = vrot.slane %v1751_v5, 4  ;;  %v2043_v36 = vrot.slane %v1752_v35, 4 }
 0x529   :  { %v1907_v32 = vrot.slane %v1894_v63, 4  ;;  %v2067_v55 = vrot.slane %v2054_v31, 4  ;;  %v3321_v1 = vperm.slane %v2028_v18, %v2558_v45  ;;  %v1792_v2 = vperm.slane %v3085_v60, %v2558_v45 }
 0x52a   :  { %v1914_v20 = vsel %vm578_vm5, %v1913_v37, %v1900_v49  ;;  %v2074_v16 = vsel %vm578_vm5, %v2073_v43, %v2060_v44  ;;  %v2039_v44 = vrot.slane %v3298_v8, 4  ;;  %v1952_v43 = vperm.slane %v3088_v19, %v2558_v45 }
 0x52b   :  { %v1918_v13 = vperm.slane %v1914_v20, %v2558_v45  ;;  %v3308_v22 = vperm.slane %v2074_v16, %v2558_v45  ;;  %v3393_v16 = vperm.slane %v2975_v41, %v2535_v7 }
 0x52c   :  { %v1649_v25 = vpop.permute.xlu1 %1648 }
 0x52d   :  { %v1747_v39 = vmul.f32 %v1649_v25, %v3146_v14  ;;  %v1748_v3 = vmul.f32 %v1649_v25, %v3224_v42  ;;  %v1537_v27 = vpop.permute.xlu2 %1536  ;;  %v1919_v57 = vrot.slane %v1918_v13, 4  ;;  %v2079_v62 = vrot.slane %v3308_v22, 4 }
 0x52e   :  { %v1715_v48 = vmul.f32 %v1537_v27, %v2957_v53  ;;  %v1716_v40 = vmul.f32 %v1537_v27, %v2950_v17  ;;  %v1953_v25 = vrot.slane %v3393_v16, 4 }
 0x52f   :  { %v1884_v4 = vsel %vm578_vm5, %v1883_v51, %v1747_v39  ;;  %v2044_v38 = vsel %vm578_vm5, %v2043_v36, %v1748_v3  ;;  %v1961_v36 = vrot.slane %v1952_v43, 4 }
 0x530   :  { %v1888_v14 = vperm.slane %v1884_v4, %v2535_v7  ;;  %v2048_v42 = vperm.slane %v2044_v38, %v2535_v7  ;;  %v1804_v53 = vsel %vm578_vm5, %v1803_v33, %v1715_v48  ;;  %v1964_v17 = vsel %vm578_vm5, %v1963_v52, %v1716_v40 }
 0x531   :  { %v1808_v26 = vperm.slane %v1804_v53, %v2535_v7  ;;  %v1968_v10 = vperm.slane %v1964_v17, %v2535_v7 }
 0x532   :  { %v1908_v11 = vsel %vm578_vm5, %v1907_v32, %v1888_v14  ;;  %v2068_v34 = vsel %vm578_vm5, %v2067_v55, %v2048_v42 }
 0x533   :  { %v1912_v33 = vperm.slane %v1908_v11, %v2558_v45  ;;  %v2072_v21 = vperm.slane %v2068_v34, %v2558_v45  ;;  %v1828_v28 = vsel %vm578_vm5, %v1827_v12, %v1808_v26  ;;  %v1988_v46 = vsel %vm578_vm5, %v1987_v61, %v1968_v10 }
 0x534   :  { %v1509_v49 = vpop.permute.xlu1 %1508  ;;  %v1832_v60 = vperm.slane %v1828_v28, %v2558_v45  ;;  %v1992_v37 = vperm.slane %v1988_v46, %v2558_v45 }
 0x535   :  { %v1707_v5 = vmul.f32 %v1509_v49, %v2925_v50  ;;  %v1708_v35 = vmul.f32 %v1509_v49, %v2919_v54  ;;  %v1920_v52 = vsel %vm578_vm5, %v1919_v57, %v1912_v33  ;;  %v2080_v12 = vsel %vm578_vm5, %v2079_v62, %v2072_v21 }
 0x536   :  { %2098 = vmatpush.msra.mxu1 %v1920_v52  ;;  %2118 = vmatpush.msrb.mxu2 %v2080_v12  ;;  %v1921_v61 = vrot.slane %v1912_v33, 4  ;;  %v1840_v29 = vsel %vm578_vm5, %v1839_v24, %v1832_v60  ;;  %v2000_v63 = vsel %vm578_vm5, %v1999_v47, %v1992_v37  ;;  %v1841_v31 = vrot.slane %v1832_v60, 4 }
 0x537   :  { %v1776_v19 = vsel %vm578_vm5, %v1775_v56, %v1707_v5  ;;  %v1936_v54 = vsel %vm578_vm5, %v1935_v15, %v1708_v35  ;;  %v2040_v50 = vsel %vm578_vm5, %v2039_v44, %v3321_v1  ;;  %v2001_v20 = vrot.slane %v1992_v37, 4  ;;  %v112_v15 = vld [vmem:[#allocation6 + $0x48] sm:$0x3] }
 0x538   :  { %v1780_v18 = vperm.slane %v1776_v19, %v2535_v7  ;;  %v1940_v24 = vperm.slane %v1936_v54, %v2535_v7  ;;  %2099 = vmatpush.msra.mxu1 %v3212_v6  ;;  %2119 = vmatpush.msrb.mxu2 %v2040_v50  ;;  %v1922_v9 = vsel %vm578_vm5, %v1918_v13, %v1921_v61  ;;  %v1801_v47 = vrot.slane %v1792_v2, 4 }
 0x539   :  { %2138 = vmatpush.msra.mxu3 %v1922_v9  ;;  %v1842_v23 = vsel %vm578_vm5, %v3262_v30, %v1841_v31  ;;  %v2002_v56 = vsel %vm578_vm5, %v3279_v58, %v2001_v20  ;;  %v2081_v30 = vrot.slane %v2072_v21, 4  ;;  %v136_v39 = vunpack.c.l.bf16 %v112_v15 }
 0x53a   :  { %2100 = vmatpush.msra.mxu1 %v1840_v29  ;;  %2120 = vmatpush.msrb.mxu2 %v2000_v63  ;;  %v1794_v41 = vsel %vm578_vm5, %v3234_v0, %v1780_v18  ;;  %v1954_v7 = vsel %vm578_vm5, %v1953_v25, %v1940_v24  ;;  %v2041_v0 = vrot.slane %v3321_v1, 4 }
 0x53b   :  { %2139 = vmatpush.msra.mxu3 %v3227_v59  ;;  %v1798_v6 = vperm.slane %v1794_v41, %v2558_v45  ;;  %v1958_v51 = vperm.slane %v1954_v7, %v2558_v45  ;;  %v2082_v45 = vsel %vm578_vm5, %v3308_v22, %v2081_v30 }
 0x53c   :  { %v2042_v13 = vsel %vm578_vm5, %v3298_v8, %v2041_v0 }
 0x53d   :  { %2140 = vmatpush.msra.mxu3 %v1842_v23  ;;  %v1802_v58 = vsel %vm578_vm5, %v1798_v6, %v1801_v47  ;;  %v1799_v3 = vrot.slane %v1798_v6, 4  ;;  %v1959_v27 = vrot.slane %v1958_v51, 4  ;;  %v1962_v48 = vsel %vm578_vm5, %v1958_v51, %v1961_v36 }
 0x53f   :  { %2141 = vmatpush.msra.mxu3 %v1802_v58  ;;  %v1800_v59 = vsel %vm578_vm5, %v1799_v3, %v1792_v2  ;;  %v1960_v40 = vsel %vm578_vm5, %v1959_v27, %v1952_v43 }
 0x540   :  { %2101 = vmatpush.msra.mxu1 %v1800_v59  ;;  %2121 = vmatpush.msrb.mxu2 %v1960_v40 }
 0x541   :  { %2212 = vmatmul.msk.f32.vlgmr.msrb.gmra.mxu2 %vm211_vm11, %v136_v39  ;;  %2211 = vmatmul.msk.f32.vlgmr.msra.gmra.mxu1 %vm211_vm11, %v136_v39 }
 0x542   :  { %2158 = vmatpush.msrb.mxu1 %v2082_v45  ;;  %2213 = vmatmul.msk.f32.vlgmr.msra.gmra.mxu3 %vm211_vm11, %v136_v39 }
 0x544   :  { %2159 = vmatpush.msrb.mxu1 %v2042_v13 }
 0x546   :  { %2160 = vmatpush.msrb.mxu1 %v2002_v56 }
 0x548   :  { %2161 = vmatpush.msrb.mxu1 %v1962_v48 }
 0x549   :  { %2214 = vmatmul.msk.f32.vlgmr.msrb.gmra.mxu1 %vm211_vm11, %v136_v39 }
 0x5be   :  { %v2103_v32 = vpop.f32.mrf.mxu1 }
 0x5c4   :  { %v2123_v55 = vpop.f32.mrf.mxu2 }
 0x5c5   :  { %v2170_v4 = vrot.slane %v2123_v55, 4  ;;  %v2143_v14 = vpop.f32.mrf.mxu3 }
 0x5c6   :  { %v2163_v38 = vpop.f32.mrf.mxu1 }
 0x5c7   :  { %v2173_v22 = vsel %vm2172_vm7, %v2103_v32, %v2170_v4  ;;  %v2171_v8 = vrot.slane %v2163_v38, 4 }
 0x5c8   :  { %2177 = vst [vmem:[%s3392_s5] sm:$0x77] %v2173_v22 }
 0x5c9   :  { %v2174_v42 = vsel %vm2172_vm7, %v2143_v14, %v2171_v8 }
 0x5ca   :  { %2178 = vst [vmem:[%s3392_s5 + $0x8] sm:$0x77] %v2174_v42 }
 0x5cb   :  { %2183 = vsyncpa [#allocation3], 1 }
 0x5cc   :  { %2184 = vsyncpa [#allocation5], 1 }
 0x5cd   :  { %2185 = vsyncpa [#allocation8], 1 }

</bundles_post_ra>
